<compile_context>
chip_gen: v5e
topology: v5e:2x2
jax: 0.10.0
libtpu: 0.0.40
codegen_flags: <defaults>
</compile_context>

<pallas_src>
from functools import partial

import jax
import jax.numpy as jnp
from jax.experimental import pallas as pl
from jax.experimental.pallas import tpu as pltpu

# ------------------------- PVTv2-b3 stage configuration ---------------------
EMBED_DIMS = (64, 128, 320)
NUM_HEADS = (1, 2, 5)
MLP_RATIOS = (8, 8, 4)
SR_RATIOS = (8, 4, 2)
DEPTHS = (3, 4, 18)
PATCH_K = (7, 3, 3)
PATCH_S = (4, 2, 2)
PATCH_P = (3, 1, 1)
IN_CH = (3, 64, 128)


# ------------------------------ Pallas kernels -------------------------------
def _make_mm_kernel(*, has_ln, ln_eps, has_res, has_out_ln, out_eps):
    """Fused [LN prologue] -> bf16 MXU matmul + bias -> [residual] -> [LN epilogue]."""
    def kernel(*refs):
        i = 0
        x = refs[i][...]
        i += 1
        if has_ln:
            g = refs[i][...]
            bt = refs[i + 1][...]
            i += 2
            x = x.astype(jnp.float32)
            mu = jnp.mean(x, axis=-1, keepdims=True)
            var = jnp.mean((x - mu) ** 2, axis=-1, keepdims=True)
            x = (x - mu) * jax.lax.rsqrt(var + ln_eps) * g + bt
        w = refs[i][...]
        bias = refs[i + 1][...]
        i += 2
        y = jnp.dot(x.astype(jnp.bfloat16), w,
                    preferred_element_type=jnp.float32) + bias
        if has_res:
            y = y + refs[i][...]
            i += 1
        if has_out_ln:
            g2 = refs[i][...]
            b2 = refs[i + 1][...]
            i += 2
            mu = jnp.mean(y, axis=-1, keepdims=True)
            var = jnp.mean((y - mu) ** 2, axis=-1, keepdims=True)
            y = (y - mu) * jax.lax.rsqrt(var + out_eps) * g2 + b2
        refs[i][...] = y.astype(refs[i].dtype)
    return kernel


def _layernorm_kernel(x_ref, g_ref, b_ref, o_ref, *, eps):
    x = x_ref[...].astype(jnp.float32)
    mu = jnp.mean(x, axis=-1, keepdims=True)
    var = jnp.mean((x - mu) ** 2, axis=-1, keepdims=True)
    y = (x - mu) * jax.lax.rsqrt(var + eps) * g_ref[...] + b_ref[...]
    o_ref[...] = y.astype(o_ref.dtype)


def _attn_branch_kernel(xn_ref, cols_ref, srw_ref, srb_ref, sng_ref, snb_ref,
                        qw_ref, qb_ref, kvw_ref, kvb_ref, pw_ref, pb_ref,
                        res_ref, o_ref, *, nh, dh, scale, sr_eps):
    """Whole PVTv2 attention branch for one batch element:
       q = LN1(x) @ Wq ; kv_in = LN(SRconv(LN1(x))) ; kv = kv_in @ Wkv
       out = softmax(q k^T * scale) v  projected and added to the residual."""
    C = nh * dh
    xn = xn_ref[0]                                           # (N, C) bf16

    # --- SR conv (space-to-depth patches @ weight) + its LayerNorm (f32) ---
    kvin = jnp.dot(cols_ref[0], srw_ref[...],
                   preferred_element_type=jnp.float32) + srb_ref[...]
    mu = jnp.mean(kvin, axis=-1, keepdims=True)
    var = jnp.mean((kvin - mu) ** 2, axis=-1, keepdims=True)
    kvin = (kvin - mu) * jax.lax.rsqrt(var + sr_eps) * sng_ref[...] + snb_ref[...]

    # --- q / kv projections (bf16 MXU, f32 accumulate) ---
    q = (jnp.dot(xn, qw_ref[...], preferred_element_type=jnp.float32)
         + qb_ref[...]).astype(jnp.bfloat16)                 # (N, C)
    kv = (jnp.dot(kvin.astype(jnp.bfloat16), kvw_ref[...],
                  preferred_element_type=jnp.float32)
          + kvb_ref[...]).astype(jnp.bfloat16)               # (M, 2C)
    pw = pw_ref[...]                                         # (C, C) bf16

    # --- per-head attention, accumulated directly through the out-projection ---
    # (no head concatenate: o_h @ proj_w[h*dh:(h+1)*dh, :] summed into a (N, C) slab)
    acc = jnp.zeros(o_ref.shape[1:], jnp.float32)            # (N, C) f32
    for h in range(nh):
        qh = q[:, h * dh:(h + 1) * dh]
        kh = kv[:, h * dh:(h + 1) * dh]
        vh = kv[:, C + h * dh:C + (h + 1) * dh]
        s = jax.lax.dot_general(qh, kh, (((1,), (1,)), ((), ())),
                                preferred_element_type=jnp.float32) * scale
        s = s - jnp.max(s, axis=-1, keepdims=True)
        p = jnp.exp(s)
        p = p * pl.reciprocal(jnp.sum(p, axis=-1, keepdims=True), approx=True)
        oh = jnp.dot(p.astype(jnp.bfloat16), vh,
                     preferred_element_type=jnp.float32)     # (N, dh)
        acc = acc + jnp.dot(oh.astype(jnp.bfloat16), pw[h * dh:(h + 1) * dh, :],
                            preferred_element_type=jnp.float32)
    o_ref[0] = (acc + pb_ref[...] + res_ref[0]).astype(o_ref.dtype)


def _dwconv_gelu_kernel(x_ref, w_ref, b_ref, o_ref):
    """Depthwise 3x3 conv (stride 1, pad 1) + bias + GELU, one channel slab.
    x_ref: (1, H+2, W+2, TC) bf16 padded input; w_ref: (9, TC) f32; b_ref: (1, TC)."""
    _, H, W, TC = o_ref.shape
    x = x_ref[0]                                             # bf16, kept packed
    w = w_ref[...].astype(jnp.float32)
    acc = jnp.zeros((H, W, TC), jnp.float32)
    for dj in range(3):
        xc = x[:, dj:dj + W, :].astype(jnp.float32)          # 3 width shifts (not 9)
        for di in range(3):
            acc = acc + xc[di:di + H] * w[di * 3 + dj:di * 3 + dj + 1, :]
    acc = acc + b_ref[...]
    # GELU fused in the epilogue; tanh approximation (EUP) -- ~1e-3 relative delta
    # vs nn.GELU() exact erf.  TODO(synk): swap to lax.erf if exact match is required.
    c0 = 0.7978845608028654  # sqrt(2/pi)
    y = 0.5 * acc * (1.0 + jnp.tanh(c0 * (acc + 0.044715 * acc * acc * acc)))
    o_ref[0] = y.astype(o_ref.dtype)


# ------------------------------ Pallas wrappers ------------------------------
def _pick_tile(M):
    """Largest sublane-aligned row tile that still yields >=2 grid steps (v7x)."""
    for t in (256, 128, 64, 32, 16, 8):
        if M % t == 0 and M // t >= 2:
            return t
    return M


def fused_linear(x, w, b, *, ln=None, out_ln=None, residual=None,
                 out_dtype=jnp.float32):
    """y = [LN](x) @ w + b [+ residual] [-> LN].  x:(M,K) w:(K,N bf16) b:(N,)."""
    M, K = x.shape
    N = w.shape[1]
    TM = _pick_tile(M)
    in_specs = [pl.BlockSpec((TM, K), lambda i: (i, 0))]
    args = [x]
    if ln is not None:
        g, bt, _ = ln
        in_specs += [pl.BlockSpec((1, K), lambda i: (0, 0)),
                     pl.BlockSpec((1, K), lambda i: (0, 0))]
        args += [g.reshape(1, K), bt.reshape(1, K)]
    in_specs += [pl.BlockSpec((K, N), lambda i: (0, 0)),
                 pl.BlockSpec((1, N), lambda i: (0, 0))]
    args += [w, b.reshape(1, N)]
    if residual is not None:
        in_specs.append(pl.BlockSpec((TM, N), lambda i: (i, 0)))
        args.append(residual)
    if out_ln is not None:
        g2, b2, _ = out_ln
        in_specs += [pl.BlockSpec((1, N), lambda i: (0, 0)),
                     pl.BlockSpec((1, N), lambda i: (0, 0))]
        args += [g2.reshape(1, N), b2.reshape(1, N)]
    kernel = _make_mm_kernel(
        has_ln=ln is not None, ln_eps=(ln[2] if ln is not None else 0.0),
        has_res=residual is not None,
        has_out_ln=out_ln is not None,
        out_eps=(out_ln[2] if out_ln is not None else 0.0))
    return pl.pallas_call(
        kernel,
        out_shape=jax.ShapeDtypeStruct((M, N), out_dtype),
        grid=(M // TM,),
        in_specs=in_specs,
        out_specs=pl.BlockSpec((TM, N), lambda i: (i, 0)),
        compiler_params=pltpu.CompilerParams(
            dimension_semantics=("parallel",)),
    )(*args)


def layer_norm(x, gamma, beta, eps, out_dtype=jnp.float32):
    """LayerNorm over the last dim of a (M, C) token matrix."""
    M, C = x.shape
    TM = _pick_tile(M)
    return pl.pallas_call(
        partial(_layernorm_kernel, eps=eps),
        out_shape=jax.ShapeDtypeStruct((M, C), out_dtype),
        grid=(M // TM,),
        in_specs=[pl.BlockSpec((TM, C), lambda i: (i, 0)),
                  pl.BlockSpec((1, C), lambda i: (0, 0)),
                  pl.BlockSpec((1, C), lambda i: (0, 0))],
        out_specs=pl.BlockSpec((TM, C), lambda i: (i, 0)),
        compiler_params=pltpu.CompilerParams(
            dimension_semantics=("parallel",)),
    )(x, gamma.reshape(1, C), beta.reshape(1, C))


def attention_branch(xn, cols, res, p, num_heads):
    """One fused pallas_call per batch element for the whole attention branch.

    xn:   (B, N, C)  bf16  LN1(x) tokens
    cols: (B, Ms, Kc) bf16 space-to-depth patches for the SR conv
    res:  (B, N, C)  f32   residual (x)
    returns (B*N, C) f32  = x + proj(attn(LN1(x)))
    """
    B, N, C = xn.shape
    Ms, Kc = cols.shape[1], cols.shape[2]
    dh = C // num_heads
    const = lambda b: (0, 0)
    out = pl.pallas_call(
        partial(_attn_branch_kernel, nh=num_heads, dh=dh,
                scale=dh ** -0.5, sr_eps=1e-5),
        out_shape=jax.ShapeDtypeStruct((B, N, C), jnp.float32),
        grid=(B,),
        in_specs=[
            pl.BlockSpec((1, N, C), lambda b: (b, 0, 0)),    # xn (LN1 tokens)
            pl.BlockSpec((1, Ms, Kc), lambda b: (b, 0, 0)),  # SR patches
            pl.BlockSpec((Kc, C), const),                    # sr_w
            pl.BlockSpec((1, C), const),                     # sr_b
            pl.BlockSpec((1, C), const),                     # srn gamma
            pl.BlockSpec((1, C), const),                     # srn beta
            pl.BlockSpec((C, C), const),                     # q_w
            pl.BlockSpec((1, C), const),                     # q_b
            pl.BlockSpec((C, 2 * C), const),                 # kv_w
            pl.BlockSpec((1, 2 * C), const),                 # kv_b
            pl.BlockSpec((C, C), const),                     # proj_w
            pl.BlockSpec((1, C), const),                     # proj_b
            pl.BlockSpec((1, N, C), lambda b: (b, 0, 0)),    # residual
        ],
        out_specs=pl.BlockSpec((1, N, C), lambda b: (b, 0, 0)),
        compiler_params=pltpu.CompilerParams(
            dimension_semantics=("parallel",)),
    )(xn, cols,
      p['sr_w'], p['sr_b'].reshape(1, C),
      p['srn_g'].reshape(1, C), p['srn_b'].reshape(1, C),
      p['q_w'], p['q_b'].reshape(1, C),
      p['kv_w'], p['kv_b'].reshape(1, 2 * C),
      p['proj_w'], p['proj_b'].reshape(1, C),
      res)
    return out.reshape(B * N, C)


def _dw_channel_tile(HW, hidden):
    """Channel tile so the f32 accumulator stays ~<=128 KB (no vreg blowout)."""
    if hidden % 128:
        return hidden
    budget = max(128, ((128 * 1024) // (HW * 4)) // 128 * 128)
    tc = min(hidden, budget)
    while hidden % tc:
        tc -= 128
    return tc


def dwconv3x3_gelu(x_nhwc, w9c, bias):
    """Depthwise 3x3 conv (stride 1, pad 1) + bias + GELU. NHWC, channel-tiled grid."""
    B, H, W, C = x_nhwc.shape
    xp = jnp.pad(x_nhwc, ((0, 0), (1, 1), (1, 1), (0, 0)))
    TC = _dw_channel_tile(H * W, C)
    return pl.pallas_call(
        _dwconv_gelu_kernel,
        out_shape=jax.ShapeDtypeStruct((B, H, W, C), jnp.bfloat16),
        grid=(B, C // TC),
        in_specs=[pl.BlockSpec((1, H + 2, W + 2, TC), lambda b, c: (b, 0, 0, c)),
                  pl.BlockSpec((9, TC), lambda b, c: (0, c)),
                  pl.BlockSpec((1, TC), lambda b, c: (0, c))],
        out_specs=pl.BlockSpec((1, H, W, TC), lambda b, c: (b, 0, 0, c)),
        compiler_params=pltpu.CompilerParams(
            dimension_semantics=("parallel", "parallel")),
    )(xp, w9c, bias.reshape(1, C))


# ------------------------------- JAX glue ------------------------------------
def conv_hw(H, W, k, s, p):
    return (H + 2 * p - k) // s + 1, (W + 2 * p - k) // s + 1


def im2col(x_nhwc, k, stride, pad):
    """Extract (k x k) patches (tap-major, channel-minor); fused by XLA under jit.
    NOTE: real pvt_v2_b3 Conv2d weights would need a permutation to match this order."""
    B, H, W, C = x_nhwc.shape
    xp = jnp.pad(x_nhwc, ((0, 0), (pad, pad), (pad, pad), (0, 0)))
    Ho, Wo = conv_hw(H, W, k, stride, pad)
    cols = []
    for i in range(k):
        for j in range(k):
            cols.append(
                xp[:, i:i + stride * Ho:stride, j:j + stride * Wo:stride, :])
    cols = jnp.stack(cols, axis=3)                 # (B, Ho, Wo, k*k, C)
    return cols.reshape(B, Ho, Wo, k * k * C), Ho, Wo


@partial(jax.jit, static_argnums=(0, 1, 2))
def patch_embed(k, stride, pad, x_nhwc, w, b, g, beta):
    """OverlapPatchEmbed: conv (im2col + Pallas matmul) fused with its LayerNorm."""
    B = x_nhwc.shape[0]
    cols, H, W = im2col(x_nhwc, k, stride, pad)
    return fused_linear(cols.reshape(B * H * W, -1), w, b,
                        out_ln=(g, beta, 1e-5))


@partial(jax.jit, static_argnums=(1, 2, 3, 4, 5, 6))
def block_forward(tok, B, H, W, C, num_heads, sr_ratio, p):
    """One PVTv2 Block: x + Attn(LN(x)); x + Mlp(LN(x)). tok: (B*H*W, C) f32."""
    N = H * W

    # --- attention branch (single fused kernel per batch element) ---
    xn = layer_norm(tok, p['n1_g'], p['n1_b'], 1e-6, out_dtype=jnp.bfloat16)
    # SR conv has kernel == stride, pad == 0 -> pure space-to-depth, no strided slices.
    # Tap order (row-major taps, channel-minor) matches the sr_w layout below.
    # TODO(synk): TB_Encoder only uses stages 1-3 (sr_ratio 8/4/2); sr_ratio==1 path
    #             (stage 4) is not implemented.
    Hs, Ws = H // sr_ratio, W // sr_ratio
    cols = (xn.reshape(B, Hs, sr_ratio, Ws, sr_ratio, C)
              .transpose(0, 1, 3, 2, 4, 5)
              .reshape(B, Hs * Ws, sr_ratio * sr_ratio * C))
    tok = attention_branch(xn.reshape(B, N, C), cols, tok.reshape(B, N, C),
                           p, num_heads)

    # --- mlp branch: LN2+fc1 fused -> dwconv3x3+bias+GELU fused -> fc2+residual ---
    h = fused_linear(tok, p['fc1_w'], p['fc1_b'],
                     ln=(p['n2_g'], p['n2_b'], 1e-6), out_dtype=jnp.bfloat16)
    hidden = h.shape[-1]
    h = dwconv3x3_gelu(h.reshape(B, H, W, hidden), p['dw_w'], p['dw_b'])
    tok = fused_linear(h.reshape(B * N, hidden), p['fc2_w'], p['fc2_b'],
                       residual=tok)
    return tok


def tb_encoder_forward(x_nchw, params):
    """Matches TB_Encoder.forward: returns the 3-level pyramid, each NCHW."""
    x = jnp.transpose(x_nchw, (0, 2, 3, 1)).astype(jnp.float32)   # -> NHWC
    B, H, W, _ = x.shape
    pyramid = []
    for s in range(3):
        ps = params['stages'][s]
        C = EMBED_DIMS[s]
        H, W = conv_hw(H, W, PATCH_K[s], PATCH_S[s], PATCH_P[s])
        tok = patch_embed(PATCH_K[s], PATCH_S[s], PATCH_P[s], x,
                          ps['pe_w'], ps['pe_b'], ps['pe_g'], ps['pe_beta'])
        for bp in ps['blocks']:
            tok = block_forward(tok, B, H, W, C, NUM_HEADS[s], SR_RATIOS[s], bp)
        # stage norm, then reshape(B,H,W,-1).permute(0,3,1,2) as in PyTorch
        tok = layer_norm(tok, ps['norm_g'], ps['norm_b'], 1e-6)
        feat = tok.reshape(B, H, W, C)
        pyramid.append(jnp.transpose(feat, (0, 3, 1, 2)))          # NCHW out
        x = feat                                                    # next stage
    return pyramid


# ------------------------- deterministic weight init -------------------------
def init_params(key):
    keys = iter(jax.random.split(key, 512))

    def randn(shape, std=0.02, dtype=jnp.bfloat16):
        w = std * jax.random.normal(next(keys), shape, dtype=jnp.float32)
        return w.astype(dtype)

    def ones(n):
        return jnp.ones((n,), jnp.float32)

    def zeros(n):
        return jnp.zeros((n,), jnp.float32)

    stages = []
    for s in range(3):
        C, Cin, k = EMBED_DIMS[s], IN_CH[s], PATCH_K[s]
        hidden = C * MLP_RATIOS[s]
        sr = SR_RATIOS[s]
        blocks = []
        for _ in range(DEPTHS[s]):
            blocks.append(dict(
                n1_g=ones(C), n1_b=zeros(C),
                q_w=randn((C, C)), q_b=zeros(C),
                kv_w=randn((C, 2 * C)), kv_b=zeros(2 * C),
                proj_w=randn((C, C)), proj_b=zeros(C),
                sr_w=randn((sr * sr * C, C)), sr_b=zeros(C),      # sr conv (tap-major)
                srn_g=ones(C), srn_b=zeros(C),
                n2_g=ones(C), n2_b=zeros(C),
                fc1_w=randn((C, hidden)), fc1_b=zeros(hidden),
                dw_w=randn((9, hidden), dtype=jnp.float32),       # depthwise taps (VPU, f32)
                dw_b=zeros(hidden),
                fc2_w=randn((hidden, C)), fc2_b=zeros(C),
            ))
        stages.append(dict(
            pe_w=randn((k * k * Cin, C)), pe_b=zeros(C),          # patch-embed conv (im2col)
            pe_g=ones(C), pe_beta=zeros(C),
            blocks=blocks,
            norm_g=ones(C), norm_b=zeros(C),
        ))
    return dict(stages=stages)


# ----------------------------------- main ------------------------------------
if __name__ == "__main__":
    root = jax.random.PRNGKey(0)
    pkey, xkey = jax.random.split(root)
    params = init_params(pkey)

    # Input matches the PyTorch module's NCHW convention: (B, 3, H, W).
    x = jax.random.normal(xkey, (2, 3, 64, 64), dtype=jnp.float32)

    pyramid = tb_encoder_forward(x, params)
    pyramid = [jax.block_until_ready(f) for f in pyramid]

    assert pyramid[0].shape == (2, 64, 16, 16)
    assert pyramid[1].shape == (2, 128, 8, 8)
    assert pyramid[2].shape == (2, 320, 4, 4)
    assert all(bool(jnp.all(jnp.isfinite(f))) for f in pyramid)

    print("KERNEL_OK")
</pallas_src>

<mosaic_0001>
module attributes {stable_mosaic.version = 11 : i64} {
  func.func @kernel(%arg0: i32, %arg1: memref<256x147xf32, #tpu.memory_space<vmem>>, %arg2: memref<147x64xbf16, #tpu.memory_space<vmem>>, %arg3: memref<1x64xf32, #tpu.memory_space<vmem>>, %arg4: memref<1x64xf32, #tpu.memory_space<vmem>>, %arg5: memref<1x64xf32, #tpu.memory_space<vmem>>, %arg6: memref<256x64xf32, #tpu.memory_space<vmem>>) attributes {dimension_semantics = [#tpu.dimension_semantics<parallel>], iteration_bounds = array<i64: 2>, scalar_prefetch = 0 : i64, scratch_operands = 0 : i64, tpu.core_type = #tpu.core_type<tc>, window_params = [{transform_indices = @transform_0, window_bounds = array<i64: 256, 147>}, {pipeline_mode = #tpu.pipeline_mode<synchronous>, transform_indices = @transform_1, window_bounds = array<i64: 147, 64>}, {pipeline_mode = #tpu.pipeline_mode<synchronous>, transform_indices = @transform_2, window_bounds = array<i64: 1, 64>}, {pipeline_mode = #tpu.pipeline_mode<synchronous>, transform_indices = @transform_3, window_bounds = array<i64: 1, 64>}, {pipeline_mode = #tpu.pipeline_mode<synchronous>, transform_indices = @transform_4, window_bounds = array<i64: 1, 64>}, {transform_indices = @transform_5, window_bounds = array<i64: 256, 64>}]} {
    %c0 = arith.constant 0 : index
    %c0_0 = arith.constant 0 : index
    %0 = vector.load %arg1[%c0, %c0_0] : memref<256x147xf32, #tpu.memory_space<vmem>>, vector<256x147xf32>
    %c0_1 = arith.constant 0 : index
    %c0_2 = arith.constant 0 : index
    %1 = vector.load %arg2[%c0_1, %c0_2] : memref<147x64xbf16, #tpu.memory_space<vmem>>, vector<147x64xbf16>
    %c0_3 = arith.constant 0 : index
    %c0_4 = arith.constant 0 : index
    %2 = vector.load %arg3[%c0_3, %c0_4] : memref<1x64xf32, #tpu.memory_space<vmem>>, vector<1x64xf32>
    %3 = arith.truncf %0 : vector<256x147xf32> to vector<256x147xbf16>
    %cst = arith.constant dense<0.000000e+00> : vector<256x64xf32>
    %4 = tpu.matmul %3, %1, %cst {dimension_numbers = #tpu.dot_dimension_numbers<[1], [0], [0], [1], [0, 0, 1, 1], [], []>} : vector<256x147xbf16>, vector<147x64xbf16>, vector<256x64xf32> -> vector<256x64xf32>
    %5 = vector.broadcast %2 : vector<1x64xf32> to vector<256x64xf32>
    %6 = arith.addf %4, %5 : vector<256x64xf32>
    %c0_5 = arith.constant 0 : index
    %c0_6 = arith.constant 0 : index
    %7 = vector.load %arg4[%c0_5, %c0_6] : memref<1x64xf32, #tpu.memory_space<vmem>>, vector<1x64xf32>
    %c0_7 = arith.constant 0 : index
    %c0_8 = arith.constant 0 : index
    %8 = vector.load %arg5[%c0_7, %c0_8] : memref<1x64xf32, #tpu.memory_space<vmem>>, vector<1x64xf32>
    %cst_9 = arith.constant dense<0.000000e+00> : vector<256xf32>
    %9 = vector.multi_reduction <add>, %6, %cst_9 [1] : vector<256x64xf32> to vector<256xf32>
    %10 = vector.shape_cast %9 : vector<256xf32> to vector<256x1xf32>
    %cst_10 = arith.constant 6.400000e+01 : f32
    %11 = vector.broadcast %cst_10 : f32 to vector<256x1xf32>
    %12 = arith.divf %10, %11 : vector<256x1xf32>
    %13 = vector.broadcast %12 : vector<256x1xf32> to vector<256x64xf32>
    %14 = arith.subf %6, %13 : vector<256x64xf32>
    %15 = arith.mulf %14, %14 : vector<256x64xf32>
    %cst_11 = arith.constant dense<0.000000e+00> : vector<256xf32>
    %16 = vector.multi_reduction <add>, %15, %cst_11 [1] : vector<256x64xf32> to vector<256xf32>
    %17 = vector.shape_cast %16 : vector<256xf32> to vector<256x1xf32>
    %cst_12 = arith.constant 6.400000e+01 : f32
    %18 = vector.broadcast %cst_12 : f32 to vector<256x1xf32>
    %19 = arith.divf %17, %18 : vector<256x1xf32>
    %20 = vector.broadcast %12 : vector<256x1xf32> to vector<256x64xf32>
    %21 = arith.subf %6, %20 : vector<256x64xf32>
    %cst_13 = arith.constant 9.99999974E-6 : f32
    %22 = vector.broadcast %cst_13 : f32 to vector<256x1xf32>
    %23 = arith.addf %19, %22 : vector<256x1xf32>
    %24 = math.rsqrt %23 : vector<256x1xf32>
    %25 = vector.broadcast %24 : vector<256x1xf32> to vector<256x64xf32>
    %26 = arith.mulf %21, %25 : vector<256x64xf32>
    %27 = vector.broadcast %7 : vector<1x64xf32> to vector<256x64xf32>
    %28 = arith.mulf %26, %27 : vector<256x64xf32>
    %29 = vector.broadcast %8 : vector<1x64xf32> to vector<256x64xf32>
    %30 = arith.addf %28, %29 : vector<256x64xf32>
    %c0_14 = arith.constant 0 : index
    %c0_15 = arith.constant 0 : index
    %31 = vector.load %arg6[%c0_14, %c0_15] : memref<256x64xf32, #tpu.memory_space<vmem>>, vector<256x64xf32>
    tpu.vector_store %arg6[%c0_14, %c0_15], %30 {strides = array<i32>} : memref<256x64xf32, #tpu.memory_space<vmem>>, vector<256x64xf32>,
    return
  }
  func.func @transform_0(%arg0: i32) -> (i32, i32) {
    %c0_i32 = arith.constant 0 : i32
    %c0_i32_0 = arith.constant 0 : i32
    return %arg0, %c0_i32 : i32, i32
  }
  func.func @transform_1(%arg0: i32) -> (i32, i32) {
    %c0_i32 = arith.constant 0 : i32
    %c0_i32_0 = arith.constant 0 : i32
    %c0_i32_1 = arith.constant 0 : i32
    return %c0_i32, %c0_i32_0 : i32, i32
  }
  func.func @transform_2(%arg0: i32) -> (i32, i32) {
    %c0_i32 = arith.constant 0 : i32
    %c0_i32_0 = arith.constant 0 : i32
    %c0_i32_1 = arith.constant 0 : i32
    return %c0_i32, %c0_i32_0 : i32, i32
  }
  func.func @transform_3(%arg0: i32) -> (i32, i32) {
    %c0_i32 = arith.constant 0 : i32
    %c0_i32_0 = arith.constant 0 : i32
    %c0_i32_1 = arith.constant 0 : i32
    return %c0_i32, %c0_i32_0 : i32, i32
  }
  func.func @transform_4(%arg0: i32) -> (i32, i32) {
    %c0_i32 = arith.constant 0 : i32
    %c0_i32_0 = arith.constant 0 : i32
    %c0_i32_1 = arith.constant 0 : i32
    return %c0_i32, %c0_i32_0 : i32, i32
  }
  func.func @transform_5(%arg0: i32) -> (i32, i32) {
    %c0_i32 = arith.constant 0 : i32
    %c0_i32_0 = arith.constant 0 : i32
    return %arg0, %c0_i32 : i32, i32
  }
}

</mosaic_0001>

<bundles_post_ra>
// kernel: patch_embed.1
= control target key start
LH: loop header
LB: loop body
LE: loop exit
PB: predicated region body
PF: predicated region fallthrough
CT: control target
= control target key end

     0   :  { %s1719_s18 = smov 0   ;;  %s2612_s0 = inlined_call_operand.vmem [shape: f32[512,147], index: 0, kind: input, shape index: {}]   ;;  %s2613_s1 = inlined_call_operand.vmem [shape: bf16[147,64], index: 1, kind: input, shape index: {}]   ;;  %s2614_s2 = inlined_call_operand.vmem [shape: f32[1,64], index: 2, kind: input, shape index: {}]   ;;  %s2615_s3 = inlined_call_operand.vmem [shape: f32[1,64], index: 3, kind: input, shape index: {}]   ;;  %s2616_s4 = inlined_call_operand.vmem [shape: f32[1,64], index: 4, kind: input, shape index: {}]   ;;  %s2617_s5 = inlined_call_operand.vmem [shape: f32[512,64], index: 5, kind: output, shape index: {}]  }
   0x1 LB: > { %s1514_s19 = sadd.s32 4294967295, %s1685_s18   ;;  %p1518_p0 = scmp.ge.s32.totalorder %s1685_s18, 1  ;;  %s1685_s18 = sphi %s1719_s18, %s15_s18  }
   0x2   : > { %p189_p1 = scmp.lt.s32.totalorder %s1685_s18, 3 }
   0x4   : > { %p190_p2 = pnand %p1518_p0, %p189_p1 }
   0x5   : > { %s1519_s24 = sshll.u32 (!%p190_p2), %s1514_s19, 5 }
   0x6   : > { %193 = sbr.rel (%p190_p2) target bundleno = 577 (0x241), region = 40  ;;  %p219_p3 = scmp.lt.s32.totalorder (!%p190_p2), %s1519_s24, 63 }
   0xb   : > { %v1586_v0 = vld [vmem:[%s2613_s1 + $0x38] sm:$0xff]  ;;  %v314_v1 = vld [vmem:[%s2613_s1 + $0x48] sm:$0x3]  ;;  %vm457_vm0 = vcmask 1040384   ;;  %vm458_vm1 = vcmask 1041408   ;;  %v1585_v3 = vld [vmem:[%s2613_s1 + $0x30] sm:$0xff] }
   0xc   : > { %v388_v2 = vunpack.c.l.b16 %v314_v1  ;;  %464 = vmatpush.bf16.msra.mxu0 %v1586_v0  ;;  %1588 = vmatpush.bf16.msra.mxu2 %v1586_v0  ;;  %v1687_v4 = vmov 65535   ;;  %s2619_s24 = smov (!%p219_p3, %s1519_s24), 63  ;;  %v1584_v9 = vld [vmem:[%s2613_s1 + $0x28] sm:$0xff]  ;;  %v1587_v10 = vld [vmem:[%s2613_s1 + $0x40] sm:$0xff]  ;;  %vm408_vm2 = vcmask 154624   ;;  %v1582_v18 = vld [vmem:[%s2613_s1 + $0x18] sm:$0xff] }
   0xd   : > { %v459_v5 = vsel %vm457_vm0, 4294967295, %v1687_v4  ;;  %s1578_s29 = sshll.u32 %s2619_s24, 4  ;;  %v1583_v14 = vld [vmem:[%s2613_s1 + $0x20] sm:$0xff]  ;;  %v1581_v19 = vld [vmem:[%s2613_s1 + $0x10] sm:$0xff]  ;;  %v1580_v20 = vld [vmem:[%s2613_s1 + $0x8] sm:$0xff]  ;;  %vm644_vm3 = vcmask 523264  }
   0xe   : > { %v398_v6 = vpack.c.b16 %v388_v2, %v388_v2  ;;  %v460_v7 = vsel %vm458_vm1, %v459_v5, 0  ;;  %s1748_s9 = scalar_lea.vmem %s2612_s0, %s1578_s29  ;;  %v1579_v26 = vld [vmem:[%s2613_s1] sm:$0xff]  ;;  %s1523_s26 = sshll.u32 %s2619_s24, 3 }
   0xf   : > { %v233_v11 = vld [vmem:[%s1748_s9 + $0x8] sm:$0xff]  ;;  %v235_v12 = vld [vmem:[%s1748_s9 + $0x18] sm:$0xff]  ;;  %v232_v27 = vld [vmem:[%s1748_s9] sm:$0xff]  ;;  %s2274_s30 = scalar_lea.vmem %s2617_s5, %s1523_s26 }
  0x10   : > { %v462_v8 = vand.u32 %v460_v7, %v398_v6  ;;  %465 = vmatpush.bf16.msra.mxu0 %v1585_v3  ;;  %1589 = vmatpush.bf16.msra.mxu2 %v1585_v3  ;;  %v317_v13 = vpack.c.bf16 %v235_v12, %v233_v11  ;;  %v269_v15 = vld [vmem:[%s1748_s9 + $0x128] sm:$0xff]  ;;  %v271_v16 = vld [vmem:[%s1748_s9 + $0x138] sm:$0xff]  ;;  %v234_v28 = vld [vmem:[%s1748_s9 + $0x10] sm:$0xff] }
  0x11   : > { %v335_v17 = vpack.c.bf16 %v271_v16, %v269_v15  ;;  %v237_v21 = vld [vmem:[%s1748_s9 + $0x28] sm:$0xff]  ;;  %v239_v22 = vld [vmem:[%s1748_s9 + $0x38] sm:$0xff]  ;;  %v264_v29 = vld [vmem:[%s1748_s9 + $0x100] sm:$0xff]  ;;  %v316_v32 = vpack.c.bf16 %v234_v28, %v232_v27 }
  0x12   : > { %559 = vmatpush.bf16.msra.mxu1 %v462_v8  ;;  %1596 = vmatpush.bf16.msra.mxu3 %v462_v8  ;;  %v273_v23 = vld [vmem:[%s1748_s9 + $0x148] sm:$0xff]  ;;  %v275_v24 = vld [vmem:[%s1748_s9 + $0x158] sm:$0xff]  ;;  %v319_v25 = vpack.c.bf16 %v239_v22, %v237_v21  ;;  %v266_v30 = vld [vmem:[%s1748_s9 + $0x110] sm:$0xff] }
  0x13   : > { %v337_v31 = vpack.c.bf16 %v275_v24, %v273_v23  ;;  %v332_v33 = vpack.c.bf16 %v266_v30, %v264_v29  ;;  %v241_v34 = vld [vmem:[%s1748_s9 + $0x48] sm:$0xff]  ;;  %v243_v35 = vld [vmem:[%s1748_s9 + $0x58] sm:$0xff]  ;;  %v236_v39 = vld [vmem:[%s1748_s9 + $0x20] sm:$0xff] }
  0x14   : > { %466 = vmatpush.bf16.msra.mxu0 %v1584_v9  ;;  %1590 = vmatpush.bf16.msra.mxu2 %v1584_v9  ;;  %v277_v36 = vld [vmem:[%s1748_s9 + $0x168] sm:$0xff]  ;;  %v279_v37 = vld [vmem:[%s1748_s9 + $0x178] sm:$0xff]  ;;  %v321_v38 = vpack.c.bf16 %v243_v35, %v241_v34  ;;  %v238_v40 = vld [vmem:[%s1748_s9 + $0x30] sm:$0xff] }
  0x15   : > { %v268_v41 = vld [vmem:[%s1748_s9 + $0x120] sm:$0xff]  ;;  %v270_v42 = vld [vmem:[%s1748_s9 + $0x130] sm:$0xff]  ;;  %v339_v43 = vpack.c.bf16 %v279_v37, %v277_v36  ;;  %v318_v44 = vpack.c.bf16 %v238_v40, %v236_v39  ;;  %v245_v46 = vld [vmem:[%s1748_s9 + $0x68] sm:$0xff] }
  0x16   : > { %560 = vmatpush.bf16.msra.mxu1 %v1587_v10  ;;  %1597 = vmatpush.bf16.msra.mxu3 %v1587_v10  ;;  %v334_v45 = vpack.c.bf16 %v270_v42, %v268_v41  ;;  %v247_v47 = vld [vmem:[%s1748_s9 + $0x78] sm:$0xff]  ;;  %v281_v48 = vld [vmem:[%s1748_s9 + $0x188] sm:$0xff]  ;;  %v240_v51 = vld [vmem:[%s1748_s9 + $0x40] sm:$0xff] }
  0x17   : > { %v283_v49 = vld [vmem:[%s1748_s9 + $0x198] sm:$0xff]  ;;  %v323_v50 = vpack.c.bf16 %v247_v47, %v245_v46  ;;  %v242_v52 = vld [vmem:[%s1748_s9 + $0x50] sm:$0xff]  ;;  %v272_v53 = vld [vmem:[%s1748_s9 + $0x140] sm:$0xff] }
  0x18   : > { %467 = vmatpush.bf16.msra.mxu0 %v1583_v14  ;;  %1591 = vmatpush.bf16.msra.mxu2 %v1583_v14  ;;  %v274_v54 = vld [vmem:[%s1748_s9 + $0x150] sm:$0xff]  ;;  %v341_v55 = vpack.c.bf16 %v283_v49, %v281_v48  ;;  %v320_v56 = vpack.c.bf16 %v242_v52, %v240_v51  ;;  %v249_v58 = vld [vmem:[%s1748_s9 + $0x88] sm:$0xff]  ;;  %v251_v59 = vld [vmem:[%s1748_s9 + $0x98] sm:$0xff] }
  0x19   : > { %1560 = vmatmul.msk.bf16.vlgmr.msra.gmra.mxu1 %vm408_vm2, %v317_v13  ;;  %1569 = vmatmul.msk.bf16.vlgmr.msra.gmra.mxu3 %vm408_vm2, %v335_v17  ;;  %v336_v57 = vpack.c.bf16 %v274_v54, %v272_v53  ;;  %v285_v60 = vld [vmem:[%s1748_s9 + $0x1a8] sm:$0xff]  ;;  %v287_v61 = vld [vmem:[%s1748_s9 + $0x1b8] sm:$0xff]  ;;  %v325_v62 = vpack.c.bf16 %v251_v59, %v249_v58  ;;  %v244_v63 = vld [vmem:[%s1748_s9 + $0x60] sm:$0xff] }
  0x1a   : > { %v246_v0 = vld [vmem:[%s1748_s9 + $0x70] sm:$0xff]  ;;  %v276_v1 = vld [vmem:[%s1748_s9 + $0x160] sm:$0xff]  ;;  %v343_v3 = vpack.c.bf16 %v287_v61, %v285_v60  ;;  %v253_v6 = vld [vmem:[%s1748_s9 + $0xa8] sm:$0xff] }
  0x1b   : > { %v278_v2 = vld [vmem:[%s1748_s9 + $0x170] sm:$0xff]  ;;  %v322_v4 = vpack.c.bf16 %v246_v0, %v244_v63  ;;  %v255_v7 = vld [vmem:[%s1748_s9 + $0xb8] sm:$0xff]  ;;  %v289_v8 = vld [vmem:[%s1748_s9 + $0x1c8] sm:$0xff] }
  0x1c   : > { %468 = vmatpush.bf16.msra.mxu0 %v1582_v18  ;;  %1592 = vmatpush.bf16.msra.mxu2 %v1582_v18  ;;  %v338_v5 = vpack.c.bf16 %v278_v2, %v276_v1  ;;  %v291_v9 = vld [vmem:[%s1748_s9 + $0x1d8] sm:$0xff]  ;;  %v327_v10 = vpack.c.bf16 %v255_v7, %v253_v6  ;;  %v248_v11 = vld [vmem:[%s1748_s9 + $0x80] sm:$0xff]  ;;  %v250_v12 = vld [vmem:[%s1748_s9 + $0x90] sm:$0xff] }
  0x1d   : > { %v280_v13 = vld [vmem:[%s1748_s9 + $0x180] sm:$0xff]  ;;  %v282_v14 = vld [vmem:[%s1748_s9 + $0x190] sm:$0xff]  ;;  %v345_v15 = vpack.c.bf16 %v291_v9, %v289_v8  ;;  %v324_v16 = vpack.c.bf16 %v250_v12, %v248_v11  ;;  %v257_v18 = vld [vmem:[%s1748_s9 + $0xc8] sm:$0xff] }
  0x1e   : > { %v340_v17 = vpack.c.bf16 %v282_v14, %v280_v13  ;;  %v295_v21 = vld [vmem:[%s1748_s9 + $0x1f8] sm:$0xff]  ;;  %v252_v23 = vld [vmem:[%s1748_s9 + $0xa0] sm:$0xff]  ;;  %v254_v24 = vld [vmem:[%s1748_s9 + $0xb0] sm:$0xff] }
  0x1f   : > { %v326_v28 = vpack.c.bf16 %v254_v24, %v252_v23  ;;  %v261_v30 = vld [vmem:[%s1748_s9 + $0xe8] sm:$0xff]  ;;  %v258_v34 = vld [vmem:[%s1748_s9 + $0xd0] sm:$0xff]  ;;  %v288_v35 = vld [vmem:[%s1748_s9 + $0x1c0] sm:$0xff] }
  0x20   : > { %469 = vmatpush.bf16.msra.mxu0 %v1581_v19  ;;  %1593 = vmatpush.bf16.msra.mxu2 %v1581_v19  ;;  %v259_v19 = vld [vmem:[%s1748_s9 + $0xd8] sm:$0xff]  ;;  %v290_v36 = vld [vmem:[%s1748_s9 + $0x1d0] sm:$0xff]  ;;  %v265_v39 = vld [vmem:[%s1748_s9 + $0x108] sm:$0xff] }
  0x21   : > { %v329_v22 = vpack.c.bf16 %v259_v19, %v257_v18  ;;  %v267_v40 = vld [vmem:[%s1748_s9 + $0x118] sm:$0xff]  ;;  %v260_v42 = vld [vmem:[%s1748_s9 + $0xe0] sm:$0xff]  ;;  %v294_v46 = vld [vmem:[%s1748_s9 + $0x1f0] sm:$0xff] }
  0x22   : > { %v333_v41 = vpack.c.bf16 %v267_v40, %v265_v39  ;;  %v1848_v51 = vld [vmem:[%s2614_s2] ss:$0 sm:$0xff] }
  0x24   : > { %470 = vmatpush.bf16.msra.mxu0 %v1580_v20  ;;  %1594 = vmatpush.bf16.msra.mxu2 %v1580_v20  ;;  %v293_v20 = vld [vmem:[%s1748_s9 + $0x1e8] sm:$0xff] }
  0x25   : > { %v347_v27 = vpack.c.bf16 %v295_v21, %v293_v20 }
  0x28   : > { %471 = vmatpush.bf16.msra.mxu0 %v1579_v26  ;;  %1595 = vmatpush.bf16.msra.mxu2 %v1579_v26  ;;  %v286_v26 = vld [vmem:[%s1748_s9 + $0x1b0] sm:$0xff] }
  0x29   : > { %1561 = vmatmul.msk.bf16.gmra.mxu1 %vm408_vm2, %v319_v25  ;;  %1570 = vmatmul.msk.bf16.gmra.mxu3 %vm408_vm2, %v337_v31  ;;  %v284_v25 = vld [vmem:[%s1748_s9 + $0x1a0] sm:$0xff]  ;;  %v263_v31 = vld [vmem:[%s1748_s9 + $0xf8] sm:$0xff] }
  0x2a   : > { %v342_v29 = vpack.c.bf16 %v286_v26, %v284_v25 }
  0x2b   : > { %472 = vmatmul.bf16.vlgmr.msra.gmra.mxu0 %v316_v32  ;;  %512 = vmatmul.bf16.vlgmr.msra.gmra.mxu2 %v332_v33  ;;  %v331_v32 = vpack.c.bf16 %v263_v31, %v261_v30  ;;  %v256_v33 = vld [vmem:[%s1748_s9 + $0xc0] sm:$0xff] }
  0x2c   : > { %v328_v37 = vpack.c.bf16 %v258_v34, %v256_v33 }
  0x39   : > { %1562 = vmatmul.msk.bf16.gmra.mxu1 %vm408_vm2, %v321_v38  ;;  %1571 = vmatmul.msk.bf16.gmra.mxu3 %vm408_vm2, %v339_v43  ;;  %v344_v38 = vpack.c.bf16 %v290_v36, %v288_v35  ;;  %v262_v43 = vld [vmem:[%s1748_s9 + $0xf0] sm:$0xff] }
  0x3a   : > { %v330_v47 = vpack.c.bf16 %v262_v43, %v260_v42 }
  0x3b   : > { %477 = vmatmul.bf16.gmra.mxu0 %v318_v44  ;;  %517 = vmatmul.bf16.gmra.mxu2 %v334_v45  ;;  %v292_v45 = vld [vmem:[%s1748_s9 + $0x1e0] sm:$0xff] }
  0x3c   : > { %v346_v48 = vpack.c.bf16 %v294_v46, %v292_v45 }
  0x49   : > { %1563 = vmatmul.msk.bf16.gmra.mxu1 %vm408_vm2, %v323_v50  ;;  %1572 = vmatmul.msk.bf16.gmra.mxu3 %vm408_vm2, %v341_v55 }
  0x4b   : > { %482 = vmatmul.bf16.gmra.mxu0 %v320_v56  ;;  %522 = vmatmul.bf16.gmra.mxu2 %v336_v57 }
  0x59   : > { %1564 = vmatmul.msk.bf16.gmra.mxu1 %vm408_vm2, %v325_v62  ;;  %1573 = vmatmul.msk.bf16.gmra.mxu3 %vm408_vm2, %v343_v3 }
  0x5b   : > { %487 = vmatmul.bf16.gmra.mxu0 %v322_v4  ;;  %527 = vmatmul.bf16.gmra.mxu2 %v338_v5 }
  0x69   : > { %1565 = vmatmul.msk.bf16.gmra.mxu1 %vm408_vm2, %v327_v10  ;;  %1574 = vmatmul.msk.bf16.gmra.mxu3 %vm408_vm2, %v345_v15 }
  0x6b   : > { %492 = vmatmul.bf16.gmra.mxu0 %v324_v16  ;;  %532 = vmatmul.bf16.gmra.mxu2 %v340_v17 }
  0x79   : > { %1566 = vmatmul.msk.bf16.gmra.mxu1 %vm408_vm2, %v329_v22  ;;  %1575 = vmatmul.msk.bf16.gmra.mxu3 %vm408_vm2, %v347_v27 }
  0x7b   : > { %497 = vmatmul.bf16.gmra.mxu0 %v326_v28  ;;  %537 = vmatmul.bf16.gmra.mxu2 %v342_v29 }
  0x89   : > { %1567 = vmatmul.msk.bf16.gmra.mxu1 %vm408_vm2, %v331_v32 }
  0x8b   : > { %502 = vmatmul.bf16.gmra.mxu0 %v328_v37  ;;  %542 = vmatmul.bf16.gmra.mxu2 %v344_v38 }
  0x96   : > { %v562_v44 = vpop.f32.mrf.mxu1 }
  0x99   : > { %1568 = vmatmul.msk.bf16.gmra.mxu1 %vm408_vm2, %v333_v41 }
  0x9b   : > { %507 = vmatmul.bf16.gmra.mxu0 %v330_v47  ;;  %547 = vmatmul.bf16.gmra.mxu2 %v346_v48 }
  0x9c   : > { %v607_v52 = vpop.f32.mrf.mxu3 }
  0x9e   : > { %v564_v49 = vpop.f32.mrf.mxu1 }
  0xa4   : > { %v609_v61 = vpop.f32.mrf.mxu3 }
  0xa6   : > { %v567_v50 = vpop.f32.mrf.mxu1 }
  0xa8   : > { %v473_v53 = vpop.f32.mrf.mxu0 }
  0xa9   : > { %v474_v54 = vadd.f32 %v1848_v51, %v473_v53 }
  0xab   : > { %v1851_v55 = vadd.f32 %v562_v44, %v474_v54 }
  0xac   : > { %v612_v5 = vpop.f32.mrf.mxu3 }
  0xad   : > { %v645_v57 = vsel %vm644_vm3, %v1851_v55, 0.0 }
  0xae   : > { %v569_v56 = vpop.f32.mrf.mxu1  ;;  %646 = vadd.xlane.f32.xlu0 %v645_v57  ;;  %v1855_v58 = vpop.f32.mrf.mxu2 }
  0xb0   : > { %v475_v59 = vpop.f32.mrf.mxu0 }
  0xb1   : > { %v476_v60 = vadd.f32 %v1848_v51, %v475_v59 }
  0xb3   : > { %v1858_v62 = vadd.f32 %v564_v49, %v476_v60 }
  0xb4   : > { %v614_v17 = vpop.f32.mrf.mxu3 }
  0xb5   : > { %v648_v0 = vsel %vm644_vm3, %v1858_v62, 0.0 }
  0xb6   : > { %v572_v63 = vpop.f32.mrf.mxu1  ;;  %649 = vadd.xlane.f32.xlu0 %v648_v0  ;;  %v1862_v1 = vpop.f32.mrf.mxu2 }
  0xb8   : > { %v478_v2 = vpop.f32.mrf.mxu0 }
  0xb9   : > { %v479_v3 = vadd.f32 %v1848_v51, %v478_v2 }
  0xbb   : > { %v1865_v4 = vadd.f32 %v567_v50, %v479_v3 }
  0xbc   : > { %v617_v28 = vpop.f32.mrf.mxu3 }
  0xbd   : > { %v651_v7 = vsel %vm644_vm3, %v1865_v4, 0.0 }
  0xbe   : > { %v574_v6 = vpop.f32.mrf.mxu1  ;;  %652 = vadd.xlane.f32.xlu1 %v651_v7  ;;  %v518_v8 = vpop.f32.mrf.mxu2 }
  0xbf   : > { %v519_v9 = vadd.f32 %v1848_v51, %v518_v8 }
  0xc0   : > { %v480_v10 = vpop.f32.mrf.mxu0 }
  0xc1   : > { %v481_v11 = vadd.f32 %v1848_v51, %v480_v10  ;;  %v1871_v12 = vadd.f32 %v607_v52, %v519_v9 }
  0xc3   : > { %v1873_v13 = vadd.f32 %v569_v56, %v481_v11  ;;  %v699_v14 = vsel %vm644_vm3, %v1871_v12, 0.0 }
  0xc4   : > { %700 = vadd.xlane.f32.xlu0 %v699_v14  ;;  %v619_v39 = vpop.f32.mrf.mxu3 }
  0xc5   : > { %v654_v16 = vsel %vm644_vm3, %v1873_v13, 0.0 }
  0xc6   : > { %v577_v15 = vpop.f32.mrf.mxu1  ;;  %655 = vadd.xlane.f32.xlu1 %v654_v16  ;;  %v520_v18 = vpop.f32.mrf.mxu2 }
  0xc7   : > { %v521_v19 = vadd.f32 %v1848_v51, %v520_v18 }
  0xc8   : > { %v483_v20 = vpop.f32.mrf.mxu0 }
  0xc9   : > { %v484_v21 = vadd.f32 %v1848_v51, %v483_v20  ;;  %v1881_v22 = vadd.f32 %v609_v61, %v521_v19 }
  0xcb   : > { %v1883_v23 = vadd.f32 %v572_v63, %v484_v21  ;;  %v702_v26 = vsel %vm644_vm3, %v1881_v22, 0.0 }
  0xcc   : > { %v622_v50 = vpop.f32.mrf.mxu3 }
  0xcd   : > { %v657_v25 = vsel %vm644_vm3, %v1883_v23, 0.0 }
  0xce   : > { %v579_v24 = vpop.f32.mrf.mxu1  ;;  %658 = vadd.xlane.f32.xlu2 %v657_v25  ;;  %703 = vadd.xlane.f32.xlu1 %v702_v26  ;;  %v523_v27 = vpop.f32.mrf.mxu2 }
  0xcf   : > { %v524_v29 = vadd.f32 %v1848_v51, %v523_v27 }
  0xd0   : > { %v485_v30 = vpop.f32.mrf.mxu0 }
  0xd1   : > { %v1890_v31 = vadd.f32 %v612_v5, %v524_v29  ;;  %v486_v32 = vadd.f32 %v1848_v51, %v485_v30 }
  0xd3   : > { %v705_v34 = vsel %vm644_vm3, %v1890_v31, 0.0  ;;  %v1896_v38 = vadd.f32 %v574_v6, %v486_v32 }
  0xd4   : > { %v624_v6 = vpop.f32.mrf.mxu3 }
  0xd5   : > { %v660_v44 = vsel %vm644_vm3, %v1896_v38, 0.0 }
  0xd6   : > { %v582_v33 = vpop.f32.mrf.mxu1  ;;  %706 = vadd.xlane.f32.xlu2 %v705_v34  ;;  %v525_v35 = vpop.f32.mrf.mxu2 }
  0xd7   : > { %v526_v36 = vadd.f32 %v1848_v51, %v525_v35 }
  0xd8   : > { %v488_v37 = vpop.f32.mrf.mxu0 }
  0xd9   : > { %v1898_v40 = vadd.f32 %v614_v17, %v526_v36  ;;  %v489_v41 = vadd.f32 %v1848_v51, %v488_v37 }
  0xdb   : > { %v708_v42 = vsel %vm644_vm3, %v1898_v40, 0.0  ;;  %v1906_v48 = vadd.f32 %v577_v15, %v489_v41 }
  0xdc   : > { %709 = vadd.xlane.f32.xlu0 %v708_v42  ;;  %v627_v19 = vpop.f32.mrf.mxu3 }
  0xdd   : > { %v663_v54 = vsel %vm644_vm3, %v1906_v48, 0.0 }
  0xde   : > { %v584_v43 = vpop.f32.mrf.mxu1  ;;  %661 = vadd.xlane.f32.xlu2 %v660_v44  ;;  %v528_v45 = vpop.f32.mrf.mxu2 }
  0xdf   : > { %v529_v46 = vadd.f32 %v1848_v51, %v528_v45 }
  0xe0   : > { %v490_v47 = vpop.f32.mrf.mxu0 }
  0xe1   : > { %v1908_v49 = vadd.f32 %v617_v28, %v529_v46  ;;  %v491_v52 = vadd.f32 %v1848_v51, %v490_v47 }
  0xe3   : > { %v711_v53 = vsel %vm644_vm3, %v1908_v49, 0.0  ;;  %v1916_v61 = vadd.f32 %v579_v24, %v491_v52 }
  0xe4   : > { %712 = vadd.xlane.f32.xlu1 %v711_v53  ;;  %664 = vadd.xlane.f32.xlu0 %v663_v54  ;;  %v629_v35 = vpop.f32.mrf.mxu3 }
  0xe5   : > { %v666_v3 = vsel %vm644_vm3, %v1916_v61, 0.0 }
  0xe6   : > { %v587_v56 = vpop.f32.mrf.mxu1  ;;  %v530_v57 = vpop.f32.mrf.mxu2 }
  0xe7   : > { %v531_v59 = vadd.f32 %v1848_v51, %v530_v57 }
  0xe8   : > { %v493_v60 = vpop.f32.mrf.mxu0 }
  0xe9   : > { %v1918_v63 = vadd.f32 %v619_v39, %v531_v59  ;;  %v494_v0 = vadd.f32 %v1848_v51, %v493_v60 }
  0xeb   : > { %v714_v2 = vsel %vm644_vm3, %v1918_v63, 0.0  ;;  %v1926_v10 = vadd.f32 %v582_v33, %v494_v0 }
  0xec   : > { %715 = vadd.xlane.f32.xlu2 %v714_v2  ;;  %667 = vadd.xlane.f32.xlu1 %v666_v3 }
  0xed   : > { %v669_v15 = vsel %vm644_vm3, %v1926_v10, 0.0 }
  0xee   : > { %v589_v5 = vpop.f32.mrf.mxu1  ;;  %v533_v7 = vpop.f32.mrf.mxu2 }
  0xef   : > { %v534_v8 = vadd.f32 %v1848_v51, %v533_v7 }
  0xf0   : > { %v495_v9 = vpop.f32.mrf.mxu0 }
  0xf1   : > { %v1928_v11 = vadd.f32 %v622_v50, %v534_v8  ;;  %v496_v14 = vadd.f32 %v1848_v51, %v495_v9  ;;  %v632_v50 = vpop.f32.mrf.mxu3 }
  0xf3   : > { %v717_v16 = vsel %vm644_vm3, %v1928_v11, 0.0  ;;  %v1936_v24 = vadd.f32 %v584_v43, %v496_v14 }
  0xf4   : > { %670 = vadd.xlane.f32.xlu2 %v669_v15  ;;  %718 = vadd.xlane.f32.xlu0 %v717_v16 }
  0xf5   : > { %v672_v28 = vsel %vm644_vm3, %v1936_v24, 0.0 }
  0xf6   : > { %v592_v17 = vpop.f32.mrf.mxu1  ;;  %v535_v18 = vpop.f32.mrf.mxu2 }
  0xf7   : > { %v536_v20 = vadd.f32 %v1848_v51, %v535_v18 }
  0xf8   : > { %v498_v21 = vpop.f32.mrf.mxu0 }
  0xf9   : > { %v1938_v25 = vadd.f32 %v624_v6, %v536_v20  ;;  %v499_v26 = vadd.f32 %v1848_v51, %v498_v21  ;;  %v634_v9 = vpop.f32.mrf.mxu3 }
  0xfb   : > { %v720_v27 = vsel %vm644_vm3, %v1938_v25, 0.0  ;;  %v1946_v34 = vadd.f32 %v587_v56, %v499_v26  ;;  %v1688_v56 = vmov 64.0  }
  0xfc   : > { %721 = vadd.xlane.f32.xlu1 %v720_v27  ;;  %673 = vadd.xlane.f32.xlu0 %v672_v28  ;;  %1611 = vrcp.f32 %v1688_v56  ;;  %v516_v56 = vadd.f32 %v1848_v51, %v1862_v1 }
  0xfd   : > { %v675_v41 = vsel %vm644_vm3, %v1946_v34, 0.0 }
  0xfe   : > { %v594_v29 = vpop.f32.mrf.mxu1  ;;  %v538_v30 = vpop.f32.mrf.mxu2 }
  0xff   : > { %v539_v32 = vadd.f32 %v1848_v51, %v538_v30 }
 0x100   : > { %v500_v33 = vpop.f32.mrf.mxu0 }
 0x101   : > { %v1948_v36 = vadd.f32 %v627_v19, %v539_v32  ;;  %v501_v37 = vadd.f32 %v1848_v51, %v500_v33  ;;  %v514_v32 = vadd.f32 %v1848_v51, %v1855_v58 }
 0x102   : > { %v1612_v3 = vpop.eup %1611 }
 0x103   : > { %v723_v39 = vsel %vm644_vm3, %v1948_v36, 0.0  ;;  %v1956_v46 = vadd.f32 %v589_v5, %v501_v37  ;;  %v742_v14 = vmul.f32 64.0, %v1612_v3  ;;  %vm746_vm4 = vweird.f32 %v1612_v3 }
 0x104   : > { %724 = vadd.xlane.f32.xlu2 %v723_v39  ;;  %676 = vadd.xlane.f32.xlu1 %v675_v41 }
 0x105   : > { %v678_v53 = vsel %vm644_vm3, %v1956_v46, 0.0  ;;  %v743_v19 = vsub.f32 1.0, %v742_v14 }
 0x106   : > { %v597_v42 = vpop.f32.mrf.mxu1  ;;  %v540_v43 = vpop.f32.mrf.mxu2 }
 0x107   : > { %v541_v44 = vadd.f32 %v1848_v51, %v540_v43  ;;  %v744_v30 = vmul.f32 %v1612_v3, %v743_v19 }
 0x108   : > { %v503_v45 = vpop.f32.mrf.mxu0 }
 0x109   : > { %v1958_v47 = vadd.f32 %v629_v35, %v541_v44  ;;  %v504_v52 = vadd.f32 %v1848_v51, %v503_v45  ;;  %v745_v41 = vadd.f32 %v1612_v3, %v744_v30 }
 0x10b   : > { %v726_v54 = vsel %vm644_vm3, %v1958_v47, 0.0  ;;  %v1966_v0 = vadd.f32 %v592_v17, %v504_v52 }
 0x10c   : > { %679 = vadd.xlane.f32.xlu2 %v678_v53  ;;  %727 = vadd.xlane.f32.xlu0 %v726_v54 }
 0x10d   : > { %v681_v8 = vsel %vm644_vm3, %v1966_v0, 0.0 }
 0x10e   : > { %v543_v57 = vpop.f32.mrf.mxu2  ;;  %v599_v2 = vpop.f32.mrf.mxu1 }
 0x10f   : > { %v544_v59 = vadd.f32 %v1848_v51, %v543_v57 }
 0x110   : > { %v505_v60 = vpop.f32.mrf.mxu0 }
 0x111   : > { %v1968_v5 = vadd.f32 %v632_v50, %v544_v59  ;;  %v506_v6 = vadd.f32 %v1848_v51, %v505_v60 }
 0x113   : > { %v729_v7 = vsel %vm644_vm3, %v1968_v5, 0.0  ;;  %v1976_v18 = vadd.f32 %v594_v29, %v506_v6  ;;  %v637_v29 = vpop.f32.mrf.mxu3 }
 0x114   : > { %730 = vadd.xlane.f32.xlu1 %v729_v7  ;;  %682 = vadd.xlane.f32.xlu0 %v681_v8 }
 0x115   : > { %v684_v28 = vsel %vm644_vm3, %v1976_v18, 0.0 }
 0x116   : > { %v545_v15 = vpop.f32.mrf.mxu2  ;;  %v602_v21 = vpop.f32.mrf.mxu1 }
 0x117   : > { %v546_v16 = vadd.f32 %v1848_v51, %v545_v15  ;;  %v1987_v35 = vadd.f32 %v602_v21, %v514_v32 }
 0x118   : > { %v508_v17 = vpop.f32.mrf.mxu0 }
 0x119   : > { %v1978_v20 = vadd.f32 %v634_v9, %v546_v16  ;;  %v509_v26 = vadd.f32 %v1848_v51, %v508_v17  ;;  %v693_v58 = vsel %vm644_vm3, %v1987_v35, 0.0 }
 0x11b   : > { %v732_v27 = vsel %vm644_vm3, %v1978_v20, 0.0  ;;  %v1990_v39 = vadd.f32 %v597_v42, %v509_v26  ;;  %v2001_v42 = vsel %vm746_vm4, %v1612_v3, %v745_v41  ;;  %v639_v7 = vpop.f32.mrf.mxu3 }
 0x11c   : > { %733 = vadd.xlane.f32.xlu2 %v732_v27  ;;  %685 = vadd.xlane.f32.xlu1 %v684_v28 }
 0x11d   : > { %v687_v50 = vsel %vm644_vm3, %v1990_v39, 0.0 }
 0x11e   : > { %v548_v33 = vpop.f32.mrf.mxu2  ;;  %v604_v53 = vpop.f32.mrf.mxu1 }
 0x11f   : > { %v549_v37 = vadd.f32 %v1848_v51, %v548_v33  ;;  %v2005_v59 = vadd.f32 %v604_v53, %v516_v56 }
 0x120   : > { %v510_v44 = vpop.f32.mrf.mxu0 }
 0x121   : > { %v647_v43 = vpop.xlane.xlu0 %646  ;;  %v1992_v45 = vadd.f32 %v637_v29, %v549_v37  ;;  %v511_v54 = vadd.f32 %v1848_v51, %v510_v44  ;;  %v696_v1 = vsel %vm644_vm3, %v2005_v59, 0.0 }
 0x122   : > { %v748_v60 = vmul.f32 %v2001_v42, %v647_v43 }
 0x123   : > { %v735_v52 = vsel %vm644_vm3, %v1992_v45, 0.0  ;;  %v2009_v9 = vadd.f32 %v599_v2, %v511_v54 }
 0x124   : > { %688 = vadd.xlane.f32.xlu2 %v687_v50  ;;  %694 = vadd.xlane.f32.xlu1 %v693_v58  ;;  %v2015_v15 = vsub.f32 %v1851_v55, %v748_v60 }
 0x125   : > { %736 = vadd.xlane.f32.xlu0 %v735_v52 }
 0x126   : > { %v550_v57 = vpop.f32.mrf.mxu2  ;;  %v812_v2 = vmul.f32 %v2015_v15, %v2015_v15 }
 0x127   : > { %v551_v6 = vadd.f32 %v1848_v51, %v550_v57  ;;  %v690_v51 = vsel %vm644_vm3, %v2009_v9, 0.0 }
 0x129   : > { %v650_v8 = vpop.xlane.xlu0 %649  ;;  %v2012_v14 = vadd.f32 %v639_v7, %v551_v6 }
 0x12a   : > { %v749_v3 = vmul.f32 %v2001_v42, %v650_v8 }
 0x12b   : > { %v738_v16 = vsel %vm644_vm3, %v2012_v14, 0.0 }
 0x12c   : > { %v2022_v17 = vsub.f32 %v1858_v62, %v749_v3  ;;  %697 = vadd.xlane.f32.xlu2 %v696_v1  ;;  %739 = vadd.xlane.f32.xlu1 %v738_v16  ;;  %v844_v62 = vsel %vm644_vm3, %v812_v2, 0.0 }
 0x12d   : > { %691 = vadd.xlane.f32.xlu0 %v690_v51 }
 0x12e   : > { %v813_v19 = vmul.f32 %v2022_v17, %v2022_v17 }
 0x130   : > { %v847_v27 = vsel %vm644_vm3, %v813_v19, 0.0 }
 0x131   : > { %v653_v55 = vpop.xlane.xlu1 %652 }
 0x132   : > { %v750_v21 = vmul.f32 %v2001_v42, %v653_v55 }
 0x134   : > { %v2032_v26 = vsub.f32 %v1865_v4, %v750_v21  ;;  %845 = vadd.xlane.f32.xlu2 %v844_v62 }
 0x135   : > { %848 = vadd.xlane.f32.xlu0 %v847_v27 }
 0x136   : > { %v814_v28 = vmul.f32 %v2032_v26, %v2032_v26 }
 0x137   : > { %v701_v30 = vpop.xlane.xlu0 %700 }
 0x138   : > { %v850_v32 = vsel %vm644_vm3, %v814_v28, 0.0  ;;  %v766_v29 = vmul.f32 %v2001_v42, %v701_v30 }
 0x139   : > { %851 = vadd.xlane.f32.xlu1 %v850_v32  ;;  %v656_v33 = vpop.xlane.xlu1 %655 }
 0x13a   : > { %v2041_v37 = vsub.f32 %v1871_v12, %v766_v29  ;;  %v751_v4 = vmul.f32 %v2001_v42, %v656_v33 }
 0x13c   : > { %v830_v41 = vmul.f32 %v2041_v37, %v2041_v37  ;;  %v2047_v43 = vsub.f32 %v1873_v13, %v751_v4 }
 0x13e   : > { %v898_v44 = vsel %vm644_vm3, %v830_v41, 0.0  ;;  %v815_v53 = vmul.f32 %v2047_v43, %v2047_v43 }
 0x13f   : > { %899 = vadd.xlane.f32.xlu2 %v898_v44 }
 0x140   : > { %v853_v13 = vsel %vm644_vm3, %v815_v53, 0.0 }
 0x141   : > { %v659_v50 = vpop.xlane.xlu2 %658  ;;  %v704_v58 = vpop.xlane.xlu1 %703 }
 0x142   : > { %v767_v52 = vmul.f32 %v2001_v42, %v704_v58  ;;  %v752_v12 = vmul.f32 %v2001_v42, %v659_v50 }
 0x144   : > { %v2055_v54 = vsub.f32 %v1881_v22, %v767_v52  ;;  %v2061_v57 = vsub.f32 %v1883_v23, %v752_v12 }
 0x146   : > { %v831_v56 = vmul.f32 %v2055_v54, %v2055_v54  ;;  %v816_v22 = vmul.f32 %v2061_v57, %v2061_v57 }
 0x147   : > { %854 = vadd.xlane.f32.xlu2 %v853_v13 }
 0x148   : > { %v901_v60 = vsel %vm644_vm3, %v831_v56, 0.0  ;;  %v856_v16 = vsel %vm644_vm3, %v816_v22, 0.0 }
 0x149   : > { %v707_v6 = vpop.xlane.xlu2 %706  ;;  %902 = vadd.xlane.f32.xlu0 %v901_v60 }
 0x14a   : > { %v768_v7 = vmul.f32 %v2001_v42, %v707_v6 }
 0x14c   : > { %v2066_v8 = vsub.f32 %v1890_v31, %v768_v7 }
 0x14e   : > { %v832_v3 = vmul.f32 %v2066_v8, %v2066_v8 }
 0x14f   : > { %v710_v1 = vpop.xlane.xlu0 %709 }
 0x150   : > { %v904_v23 = vsel %vm644_vm3, %v832_v3, 0.0  ;;  %v769_v51 = vmul.f32 %v2001_v42, %v710_v1 }
 0x151   : > { %v662_v2 = vpop.xlane.xlu2 %661  ;;  %905 = vadd.xlane.f32.xlu1 %v904_v23  ;;  %857 = vadd.xlane.f32.xlu0 %v856_v16 }
 0x152   : > { %v753_v55 = vmul.f32 %v2001_v42, %v662_v2  ;;  %v2077_v31 = vsub.f32 %v1898_v40, %v769_v51 }
 0x154   : > { %v2080_v19 = vsub.f32 %v1896_v38, %v753_v55  ;;  %v833_v21 = vmul.f32 %v2077_v31, %v2077_v31 }
 0x156   : > { %v817_v62 = vmul.f32 %v2080_v19, %v2080_v19  ;;  %v907_v27 = vsel %vm644_vm3, %v833_v21, 0.0 }
 0x157   : > { %v713_v28 = vpop.xlane.xlu1 %712  ;;  %908 = vadd.xlane.f32.xlu2 %v907_v27  ;;  %v665_v30 = vpop.xlane.xlu0 %664 }
 0x158   : > { %v859_v32 = vsel %vm644_vm3, %v817_v62, 0.0  ;;  %v770_v29 = vmul.f32 %v2001_v42, %v713_v28  ;;  %v754_v40 = vmul.f32 %v2001_v42, %v665_v30 }
 0x159   : > { %860 = vadd.xlane.f32.xlu1 %v859_v32 }
 0x15a   : > { %v2091_v38 = vsub.f32 %v1908_v49, %v770_v29  ;;  %v2094_v33 = vsub.f32 %v1906_v48, %v754_v40 }
 0x15c   : > { %v834_v4 = vmul.f32 %v2091_v38, %v2091_v38  ;;  %v818_v41 = vmul.f32 %v2094_v33, %v2094_v33 }
 0x15e   : > { %v910_v44 = vsel %vm644_vm3, %v834_v4, 0.0  ;;  %v862_v50 = vsel %vm644_vm3, %v818_v41, 0.0 }
 0x15f   : > { %v716_v58 = vpop.xlane.xlu2 %715  ;;  %v668_v52 = vpop.xlane.xlu1 %667  ;;  %911 = vadd.xlane.f32.xlu0 %v910_v44  ;;  %863 = vadd.xlane.f32.xlu2 %v862_v50 }
 0x160   : > { %v771_v49 = vmul.f32 %v2001_v42, %v716_v58  ;;  %v755_v53 = vmul.f32 %v2001_v42, %v668_v52 }
 0x162   : > { %v2105_v48 = vsub.f32 %v1918_v63, %v771_v49  ;;  %v2108_v12 = vsub.f32 %v1916_v61, %v755_v53 }
 0x164   : > { %v835_v56 = vmul.f32 %v2105_v48, %v2105_v48  ;;  %v819_v13 = vmul.f32 %v2108_v12, %v2108_v12 }
 0x166   : > { %v913_v60 = vsel %vm644_vm3, %v835_v56, 0.0  ;;  %v865_v6 = vsel %vm644_vm3, %v819_v13, 0.0 }
 0x167   : > { %v671_v7 = vpop.xlane.xlu2 %670  ;;  %914 = vadd.xlane.f32.xlu1 %v913_v60  ;;  %866 = vadd.xlane.f32.xlu0 %v865_v6  ;;  %v719_v22 = vpop.xlane.xlu0 %718 }
 0x168   : > { %v756_v63 = vmul.f32 %v2001_v42, %v671_v7  ;;  %v772_v3 = vmul.f32 %v2001_v42, %v719_v22 }
 0x16a   : > { %v2119_v61 = vsub.f32 %v1926_v10, %v756_v63  ;;  %v2122_v1 = vsub.f32 %v1928_v11, %v772_v3 }
 0x16c   : > { %v820_v23 = vmul.f32 %v2119_v61, %v2119_v61  ;;  %v836_v16 = vmul.f32 %v2122_v1, %v2122_v1 }
 0x16e   : > { %v868_v51 = vsel %vm644_vm3, %v820_v23, 0.0  ;;  %v916_v2 = vsel %vm644_vm3, %v836_v16, 0.0 }
 0x16f   : > { %869 = vadd.xlane.f32.xlu1 %v868_v51  ;;  %v722_v55 = vpop.xlane.xlu1 %721  ;;  %917 = vadd.xlane.f32.xlu2 %v916_v2  ;;  %v674_v21 = vpop.xlane.xlu0 %673 }
 0x170   : > { %v773_v10 = vmul.f32 %v2001_v42, %v722_v55  ;;  %v757_v62 = vmul.f32 %v2001_v42, %v674_v21 }
 0x172   : > { %v2133_v11 = vsub.f32 %v1938_v25, %v773_v10  ;;  %v2136_v27 = vsub.f32 %v1936_v24, %v757_v62 }
 0x174   : > { %v837_v28 = vmul.f32 %v2133_v11, %v2133_v11  ;;  %v821_v30 = vmul.f32 %v2136_v27, %v2136_v27 }
 0x176   : > { %v919_v32 = vsel %vm644_vm3, %v837_v28, 0.0  ;;  %v871_v29 = vsel %vm644_vm3, %v821_v30, 0.0 }
 0x177   : > { %v725_v40 = vpop.xlane.xlu2 %724  ;;  %v677_v4 = vpop.xlane.xlu1 %676  ;;  %920 = vadd.xlane.f32.xlu0 %v919_v32  ;;  %872 = vadd.xlane.f32.xlu2 %v871_v29 }
 0x178   : > { %v774_v25 = vmul.f32 %v2001_v42, %v725_v40  ;;  %v758_v41 = vmul.f32 %v2001_v42, %v677_v4 }
 0x17a   : > { %v2147_v24 = vsub.f32 %v1948_v36, %v774_v25  ;;  %v2150_v44 = vsub.f32 %v1946_v34, %v758_v41 }
 0x17c   : > { %v838_v50 = vmul.f32 %v2147_v24, %v2147_v24  ;;  %v822_v58 = vmul.f32 %v2150_v44, %v2150_v44 }
 0x17e   : > { %v922_v52 = vsel %vm644_vm3, %v838_v50, 0.0  ;;  %v874_v49 = vsel %vm644_vm3, %v822_v58, 0.0 }
 0x17f   : > { %v680_v53 = vpop.xlane.xlu2 %679  ;;  %923 = vadd.xlane.f32.xlu1 %v922_v52  ;;  %875 = vadd.xlane.f32.xlu0 %v874_v49  ;;  %v728_v56 = vpop.xlane.xlu0 %727 }
 0x180   : > { %v759_v36 = vmul.f32 %v2001_v42, %v680_v53  ;;  %v775_v13 = vmul.f32 %v2001_v42, %v728_v56 }
 0x182   : > { %v2161_v34 = vsub.f32 %v1956_v46, %v759_v36  ;;  %v2164_v60 = vsub.f32 %v1958_v47, %v775_v13 }
 0x184   : > { %v823_v6 = vmul.f32 %v2161_v34, %v2161_v34  ;;  %v839_v7 = vmul.f32 %v2164_v60, %v2164_v60 }
 0x186   : > { %v877_v22 = vsel %vm644_vm3, %v823_v6, 0.0  ;;  %v925_v63 = vsel %vm644_vm3, %v839_v7, 0.0 }
 0x187   : > { %878 = vadd.xlane.f32.xlu1 %v877_v22  ;;  %v731_v3 = vpop.xlane.xlu1 %730  ;;  %926 = vadd.xlane.f32.xlu2 %v925_v63  ;;  %v683_v23 = vpop.xlane.xlu0 %682 }
 0x188   : > { %v776_v46 = vmul.f32 %v2001_v42, %v731_v3  ;;  %v760_v16 = vmul.f32 %v2001_v42, %v683_v23 }
 0x18a   : > { %v2175_v47 = vsub.f32 %v1968_v5, %v776_v46  ;;  %v2178_v51 = vsub.f32 %v1966_v0, %v760_v16 }
 0x18c   : > { %v840_v2 = vmul.f32 %v2175_v47, %v2175_v47  ;;  %v824_v55 = vmul.f32 %v2178_v51, %v2178_v51 }
 0x18e   : > { %v928_v21 = vsel %vm644_vm3, %v840_v2, 0.0  ;;  %v880_v10 = vsel %vm644_vm3, %v824_v55, 0.0 }
 0x18f   : > { %v734_v62 = vpop.xlane.xlu2 %733  ;;  %v686_v28 = vpop.xlane.xlu1 %685  ;;  %929 = vadd.xlane.f32.xlu0 %v928_v21  ;;  %881 = vadd.xlane.f32.xlu2 %v880_v10 }
 0x190   : > { %v761_v5 = vmul.f32 %v2001_v42, %v686_v28  ;;  %v777_v7 = vmul.f32 %v2001_v42, %v734_v62 }
 0x192   : > { %v2188_v30 = vsub.f32 %v1976_v18, %v761_v5 }
 0x194   : > { %v825_v0 = vmul.f32 %v2188_v30, %v2188_v30 }
 0x196   : > { %v883_v32 = vsel %vm644_vm3, %v825_v0, 0.0 }
 0x197   : > { %v689_v29 = vpop.xlane.xlu2 %688  ;;  %v695_v40 = vpop.xlane.xlu1 %694  ;;  %884 = vadd.xlane.f32.xlu0 %v883_v32 }
 0x198   : > { %v762_v4 = vmul.f32 %v2001_v42, %v689_v29  ;;  %v764_v25 = vmul.f32 %v2001_v42, %v695_v40  ;;  %v737_v41 = vpop.xlane.xlu0 %736 }
 0x199   : > { %v778_v3 = vmul.f32 %v2001_v42, %v737_v41 }
 0x19a   : > { %v2196_v50 = vsub.f32 %v1990_v39, %v762_v4  ;;  %v2199_v58 = vsub.f32 %v1987_v35, %v764_v25 }
 0x19b   : > { %v2233_v21 = vsub.f32 %v1992_v45, %v778_v3 }
 0x19c   : > { %v826_v18 = vmul.f32 %v2196_v50, %v2196_v50  ;;  %v828_v52 = vmul.f32 %v2199_v58, %v2199_v58 }
 0x19d   : > { %v842_v45 = vmul.f32 %v2233_v21, %v2233_v21 }
 0x19e   : > { %v886_v49 = vsel %vm644_vm3, %v826_v18, 0.0  ;;  %v892_v53 = vsel %vm644_vm3, %v828_v52, 0.0 }
 0x19f   : > { %v698_v56 = vpop.xlane.xlu2 %697  ;;  %887 = vadd.xlane.f32.xlu1 %v886_v49  ;;  %v740_v36 = vpop.xlane.xlu1 %739  ;;  %893 = vadd.xlane.f32.xlu0 %v892_v53  ;;  %v934_v41 = vsel %vm644_vm3, %v842_v45, 0.0 }
 0x1a0   : > { %v765_v39 = vmul.f32 %v2001_v42, %v698_v56  ;;  %v779_v13 = vmul.f32 %v2001_v42, %v740_v36  ;;  %v692_v35 = vpop.xlane.xlu0 %691 }
 0x1a1   : > { %v763_v6 = vmul.f32 %v2001_v42, %v692_v35 }
 0x1a2   : > { %v2212_v22 = vsub.f32 %v2005_v59, %v765_v39  ;;  %v2215_v63 = vsub.f32 %v2012_v14, %v779_v13  ;;  %v2228_v59 = vsub.f32 %v1978_v20, %v777_v7 }
 0x1a3   : > { %v2219_v23 = vsub.f32 %v2009_v9, %v763_v6 }
 0x1a4   : > { %v829_v46 = vmul.f32 %v2212_v22, %v2212_v22  ;;  %v843_v16 = vmul.f32 %v2215_v63, %v2215_v63  ;;  %v841_v0 = vmul.f32 %v2228_v59, %v2228_v59 }
 0x1a5   : > { %v827_v2 = vmul.f32 %v2219_v23, %v2219_v23 }
 0x1a6   : > { %v895_v14 = vsel %vm644_vm3, %v829_v46, 0.0  ;;  %v937_v55 = vsel %vm644_vm3, %v843_v16, 0.0  ;;  %v931_v25 = vsel %vm644_vm3, %v841_v0, 0.0 }
 0x1a7   : > { %896 = vadd.xlane.f32.xlu1 %v895_v14  ;;  %v846_v9 = vpop.xlane.xlu2 %845  ;;  %938 = vadd.xlane.f32.xlu0 %v937_v55  ;;  %v889_v10 = vsel %vm644_vm3, %v827_v2, 0.0 }
 0x1a8   : > { %v940_v62 = vmul.f32 %v846_v9, %v2001_v42  ;;  %890 = vadd.xlane.f32.xlu2 %v889_v10  ;;  %v849_v28 = vpop.xlane.xlu0 %848 }
 0x1a9   : > { %v941_v5 = vmul.f32 %v849_v28, %v2001_v42 }
 0x1aa   : > { %v972_v20 = vadd.f32 1e-05, %v940_v62 }
 0x1ab   : > { %v973_v32 = vadd.f32 1e-05, %v941_v5  ;;  %v2253_v5 = vld [vmem:[%s2615_s3] ss:$0 sm:$0xff] }
 0x1ac   : > { %v852_v29 = vpop.xlane.xlu1 %851  ;;  %1613 = vrsqrt.f32 %v972_v20  ;;  %vm1010_vm7 = vweird.f32 %v972_v20 }
 0x1ad   : > { %v942_v40 = vmul.f32 %v852_v29, %v2001_v42  ;;  %1615 = vrsqrt.f32 %v973_v32  ;;  %vm1020_vm9 = vweird.f32 %v973_v32 }
 0x1af   : > { %v974_v4 = vadd.f32 1e-05, %v942_v40  ;;  %932 = vadd.xlane.f32.xlu1 %v931_v25 }
 0x1b0   : > { %935 = vadd.xlane.f32.xlu2 %v934_v41  ;;  %v2262_v41 = vld [vmem:[%s2616_s4] ss:$0 sm:$0xff] }
 0x1b1   : > { %1617 = vrsqrt.f32 %v974_v4  ;;  %vm1030_vm12 = vweird.f32 %v974_v4 }
 0x1b2   : > { %v1614_v18 = vpop.eup %1613  ;;  %v900_v52 = vpop.xlane.xlu2 %899 }
 0x1b3   : > { %v1616_v49 = vpop.eup %1615  ;;  %v1005_v53 = vmul.f32 %v1614_v18, %v972_v20  ;;  %v958_v56 = vmul.f32 %v900_v52, %v2001_v42  ;;  %vm1011_vm5 = vweird.f32 %v1614_v18 }
 0x1b4   : > { %v1015_v36 = vmul.f32 %v1616_v49, %v973_v32  ;;  %vm1021_vm6 = vweird.f32 %v1616_v49  ;;  %vm1012_vm8 = vmor %vm1010_vm7, %vm1011_vm5 }
 0x1b5   : > { %v1006_v39 = vmul.f32 %v1614_v18, %v1005_v53  ;;  %v2246_v13 = vadd.f32 1e-05, %v958_v56  ;;  %vm1022_vm10 = vmor %vm1020_vm9, %vm1021_vm6 }
 0x1b6   : > { %v1016_v6 = vmul.f32 %v1616_v49, %v1015_v36 }
 0x1b7   : > { %v1618_v35 = vpop.eup %1617  ;;  %v1007_v7 = vmul.f32 0.5, %v1006_v39  ;;  %1619 = vrsqrt.f32 %v2246_v13  ;;  %vm1190_vm15 = vweird.f32 %v2246_v13 }
 0x1b8   : > { %v1025_v3 = vmul.f32 %v1618_v35, %v974_v4  ;;  %v1017_v46 = vmul.f32 0.5, %v1016_v6  ;;  %vm1031_vm11 = vweird.f32 %v1618_v35 }
 0x1b9   : > { %v1008_v16 = vsub.f32 1.5, %v1007_v7  ;;  %vm1032_vm13 = vmor %vm1030_vm12, %vm1031_vm11 }
 0x1ba   : > { %v1026_v2 = vmul.f32 %v1618_v35, %v1025_v3  ;;  %v1018_v14 = vsub.f32 1.5, %v1017_v46  ;;  %v855_v55 = vpop.xlane.xlu2 %854 }
 0x1bb   : > { %v1009_v9 = vmul.f32 %v1614_v18, %v1008_v16  ;;  %v943_v62 = vmul.f32 %v855_v55, %v2001_v42 }
 0x1bc   : > { %v1027_v10 = vmul.f32 0.5, %v1026_v2  ;;  %v903_v28 = vpop.xlane.xlu0 %902  ;;  %v1019_v0 = vmul.f32 %v1616_v49, %v1018_v14 }
 0x1bd   : > { %v959_v29 = vmul.f32 %v903_v28, %v2001_v42  ;;  %v1620_v45 = vpop.eup %1619  ;;  %v1013_v40 = vsel %vm1012_vm8, %v1614_v18, %v1009_v9  ;;  %v2256_v20 = vadd.f32 1e-05, %v943_v62 }
 0x1be   : > { %v1028_v25 = vsub.f32 1.5, %v1027_v10  ;;  %v1324_v52 = vmul.f32 %v1013_v40, %v2015_v15  ;;  %v1023_v53 = vsel %vm1022_vm10, %v1616_v49, %v1019_v0  ;;  %v1185_v32 = vmul.f32 %v1620_v45, %v2246_v13 }
 0x1bf   : > { %v1325_v56 = vmul.f32 %v1023_v53, %v2022_v17  ;;  %1621 = vrsqrt.f32 %v2256_v20  ;;  %v2269_v6 = vadd.f32 1e-05, %v959_v29  ;;  %vm1191_vm14 = vweird.f32 %v1620_v45 }
 0x1c0   : > { %v1029_v36 = vmul.f32 %v1618_v35, %v1028_v25  ;;  %v1359_v18 = vmul.f32 %v2253_v5, %v1324_v52  ;;  %v1186_v39 = vmul.f32 %v1620_v45, %v1185_v32  ;;  %vm1192_vm0 = vmor %vm1190_vm15, %vm1191_vm14  ;;  %vm1040_vm2 = vweird.f32 %v2256_v20 }
 0x1c1   : > { %v1360_v15 = vmul.f32 %v2253_v5, %v1325_v56  ;;  %1623 = vrsqrt.f32 %v2269_v6  ;;  %vm1200_vm6 = vweird.f32 %v2269_v6 }
 0x1c2   : > { %v1033_v17 = vsel %vm1032_vm13, %v1618_v35, %v1029_v36  ;;  %v1394_v4 = vadd.f32 %v2262_v41, %v1359_v18  ;;  %v1187_v7 = vmul.f32 0.5, %v1186_v39 }
 0x1c3   : > { %v1326_v49 = vmul.f32 %v1033_v17, %v2032_v26  ;;  %v1395_v3 = vadd.f32 %v2262_v41, %v1360_v15 }
 0x1c4   : > { %v906_v46 = vpop.xlane.xlu1 %905  ;;  %v858_v16 = vpop.xlane.xlu0 %857  ;;  %1426 = vst.msk [vmem:[%s2274_s30] sm:$0xff] %vm644_vm3, %v1394_v4  ;;  %v1188_v14 = vsub.f32 1.5, %v1187_v7 }
 0x1c5   : > { %v1361_v2 = vmul.f32 %v2253_v5, %v1326_v49  ;;  %v960_v35 = vmul.f32 %v906_v46, %v2001_v42  ;;  %v944_v55 = vmul.f32 %v858_v16, %v2001_v42  ;;  %v1622_v9 = vpop.eup %1621  ;;  %1427 = vst.msk [vmem:[%s2274_s30 + $0x8] sm:$0xff] %vm644_vm3, %v1395_v3 }
 0x1c6   : > { %v1189_v10 = vmul.f32 %v1620_v45, %v1188_v14  ;;  %v1035_v62 = vmul.f32 %v1622_v9, %v2256_v20  ;;  %vm1041_vm1 = vweird.f32 %v1622_v9 }
 0x1c7   : > { %v1396_v26 = vadd.f32 %v2262_v41, %v1361_v2  ;;  %v2291_v28 = vadd.f32 1e-05, %v960_v35  ;;  %v2293_v0 = vadd.f32 1e-05, %v944_v55  ;;  %v1624_v29 = vpop.eup %1623  ;;  %vm1042_vm4 = vmor %vm1040_vm2, %vm1041_vm1 }
 0x1c8   : > { %v1193_v40 = vsel %vm1192_vm0, %v1620_v45, %v1189_v10  ;;  %v1036_v25 = vmul.f32 %v1622_v9, %v1035_v62  ;;  %v1195_v53 = vmul.f32 %v1624_v29, %v2269_v6  ;;  %vm1201_vm5 = vweird.f32 %v1624_v29 }
 0x1c9   : > { %1428 = vst.msk [vmem:[%s2274_s30 + $0x10] sm:$0xff] %vm644_vm3, %v1396_v26  ;;  %v1342_v52 = vmul.f32 %v1193_v40, %v2041_v37  ;;  %1625 = vrsqrt.f32 %v2291_v28  ;;  %vm1202_vm7 = vmor %vm1200_vm6, %vm1201_vm5  ;;  %vm1210_vm10 = vweird.f32 %v2291_v28  ;;  %vm1050_vm12 = vweird.f32 %v2293_v0 }
 0x1ca   : > { %v1037_v32 = vmul.f32 0.5, %v1036_v25  ;;  %1627 = vrsqrt.f32 %v2293_v0  ;;  %v909_v13 = vpop.xlane.xlu2 %908  ;;  %v1196_v36 = vmul.f32 %v1624_v29, %v1195_v53 }
 0x1cb   : > { %v1377_v56 = vmul.f32 %v2253_v5, %v1342_v52  ;;  %v961_v18 = vmul.f32 %v909_v13, %v2001_v42 }
 0x1cc   : > { %v861_v39 = vpop.xlane.xlu1 %860  ;;  %v1038_v15 = vsub.f32 1.5, %v1037_v32  ;;  %v1197_v17 = vmul.f32 0.5, %v1196_v36 }
 0x1cd   : > { %v945_v45 = vmul.f32 %v861_v39, %v2001_v42  ;;  %v1412_v37 = vadd.f32 %v2262_v41, %v1377_v56  ;;  %v2305_v4 = vadd.f32 1e-05, %v961_v18 }
 0x1ce   : > { %v1039_v49 = vmul.f32 %v1622_v9, %v1038_v15  ;;  %v1198_v46 = vsub.f32 1.5, %v1197_v17 }
 0x1cf   : > { %v2308_v7 = vadd.f32 1e-05, %v945_v45  ;;  %v1626_v3 = vpop.eup %1625  ;;  %1444 = vst.msk [vmem:[%s2274_s30 + $0x90] sm:$0xff] %vm644_vm3, %v1412_v37  ;;  %1629 = vrsqrt.f32 %v2305_v4  ;;  %vm1220_vm14 = vweird.f32 %v2305_v4 }
 0x1d0   : > { %v1628_v16 = vpop.eup %1627  ;;  %v1043_v2 = vsel %vm1042_vm4, %v1622_v9, %v1039_v49  ;;  %v1205_v14 = vmul.f32 %v1626_v3, %v2291_v28  ;;  %v1199_v55 = vmul.f32 %v1624_v29, %v1198_v46  ;;  %vm1211_vm8 = vweird.f32 %v1626_v3 }
 0x1d1   : > { %1631 = vrsqrt.f32 %v2308_v7  ;;  %v1327_v35 = vmul.f32 %v1043_v2, %v2047_v43  ;;  %v1045_v20 = vmul.f32 %v1628_v16, %v2293_v0  ;;  %vm1051_vm9 = vweird.f32 %v1628_v16  ;;  %vm1212_vm11 = vmor %vm1210_vm10, %vm1211_vm8 }
 0x1d2   : > { %v1206_v26 = vmul.f32 %v1626_v3, %v1205_v14  ;;  %v864_v10 = vpop.xlane.xlu2 %863  ;;  %v912_v62 = vpop.xlane.xlu0 %911  ;;  %v1203_v25 = vsel %vm1202_vm7, %v1624_v29, %v1199_v55  ;;  %vm1052_vm13 = vmor %vm1050_vm12, %vm1051_vm9  ;;  %vm1060_vm1 = vweird.f32 %v2308_v7 }
 0x1d3   : > { %v1362_v40 = vmul.f32 %v2253_v5, %v1327_v35  ;;  %v1046_v9 = vmul.f32 %v1628_v16, %v1045_v20  ;;  %v946_v52 = vmul.f32 %v864_v10, %v2001_v42  ;;  %v1343_v53 = vmul.f32 %v1203_v25, %v2055_v54 }
 0x1d4   : > { %v1207_v32 = vmul.f32 0.5, %v1206_v26  ;;  %v962_v36 = vmul.f32 %v912_v62, %v2001_v42 }
 0x1d5   : > { %v1630_v43 = vpop.eup %1629  ;;  %v1397_v13 = vadd.f32 %v2262_v41, %v1362_v40  ;;  %v1047_v6 = vmul.f32 0.5, %v1046_v9  ;;  %v2322_v56 = vadd.f32 1e-05, %v946_v52  ;;  %v1378_v39 = vmul.f32 %v2253_v5, %v1343_v53 }
 0x1d6   : > { %v1208_v15 = vsub.f32 1.5, %v1207_v32  ;;  %v1215_v29 = vmul.f32 %v1630_v43, %v2305_v4  ;;  %v2334_v14 = vadd.f32 1e-05, %v962_v36  ;;  %vm1221_vm15 = vweird.f32 %v1630_v43 }
 0x1d7   : > { %v1632_v18 = vpop.eup %1631  ;;  %1429 = vst.msk [vmem:[%s2274_s30 + $0x18] sm:$0xff] %vm644_vm3, %v1397_v13  ;;  %v1048_v54 = vsub.f32 1.5, %v1047_v6  ;;  %1633 = vrsqrt.f32 %v2322_v56  ;;  %v1413_v37 = vadd.f32 %v2262_v41, %v1378_v39  ;;  %vm1222_vm2 = vmor %vm1220_vm14, %vm1221_vm15  ;;  %vm1070_vm6 = vweird.f32 %v2322_v56 }
 0x1d8   : > { %v1055_v45 = vmul.f32 %v1632_v18, %v2308_v7  ;;  %v1209_v17 = vmul.f32 %v1626_v3, %v1208_v15  ;;  %v1216_v49 = vmul.f32 %v1630_v43, %v1215_v29  ;;  %1635 = vrsqrt.f32 %v2334_v14 }
 0x1d9   : > { %v1049_v46 = vmul.f32 %v1628_v16, %v1048_v54  ;;  %1445 = vst.msk [vmem:[%s2274_s30 + $0x98] sm:$0xff] %vm644_vm3, %v1413_v37  ;;  %vm1061_vm0 = vweird.f32 %v1632_v18  ;;  %vm1230_vm9 = vweird.f32 %v2334_v14 }
 0x1da   : > { %v1056_v2 = vmul.f32 %v1632_v18, %v1055_v45  ;;  %v1213_v35 = vsel %vm1212_vm11, %v1626_v3, %v1209_v17  ;;  %v1217_v55 = vmul.f32 0.5, %v1216_v49  ;;  %v915_v20 = vpop.xlane.xlu1 %914  ;;  %v867_v26 = vpop.xlane.xlu0 %866  ;;  %vm1062_vm4 = vmor %vm1060_vm1, %vm1061_vm0 }
 0x1db   : > { %v1344_v10 = vmul.f32 %v1213_v35, %v2066_v8  ;;  %v1053_v28 = vsel %vm1052_vm13, %v1628_v16, %v1049_v46  ;;  %v963_v25 = vmul.f32 %v915_v20, %v2001_v42  ;;  %v947_v53 = vmul.f32 %v867_v26, %v2001_v42 }
 0x1dc   : > { %v1057_v62 = vmul.f32 0.5, %v1056_v2  ;;  %v1328_v0 = vmul.f32 %v1053_v28, %v2061_v57  ;;  %v1218_v40 = vsub.f32 1.5, %v1217_v55 }
 0x1dd   : > { %v1634_v9 = vpop.eup %1633  ;;  %v1379_v3 = vmul.f32 %v2253_v5, %v1344_v10  ;;  %v2351_v6 = vadd.f32 1e-05, %v963_v25  ;;  %v2353_v36 = vadd.f32 1e-05, %v947_v53 }
 0x1de   : > { %v1058_v52 = vsub.f32 1.5, %v1057_v62  ;;  %v1363_v8 = vmul.f32 %v2253_v5, %v1328_v0  ;;  %v1219_v16 = vmul.f32 %v1630_v43, %v1218_v40  ;;  %v1065_v57 = vmul.f32 %v1634_v9, %v2322_v56  ;;  %v1636_v54 = vpop.eup %1635 }
 0x1df   : > { %v1414_v32 = vadd.f32 %v2262_v41, %v1379_v3  ;;  %1637 = vrsqrt.f32 %v2351_v6  ;;  %v1225_v17 = vmul.f32 %v1636_v54, %v2334_v14  ;;  %vm1071_vm5 = vweird.f32 %v1634_v9 }
 0x1e0   : > { %v1059_v13 = vmul.f32 %v1632_v18, %v1058_v52  ;;  %v1398_v39 = vadd.f32 %v2262_v41, %v1363_v8  ;;  %v1223_v15 = vsel %vm1222_vm2, %v1630_v43, %v1219_v16  ;;  %v1066_v29 = vmul.f32 %v1634_v9, %v1065_v57  ;;  %vm1072_vm7 = vmor %vm1070_vm6, %vm1071_vm5 }
 0x1e1   : > { %1446 = vst.msk [vmem:[%s2274_s30 + $0xa0] sm:$0xff] %vm644_vm3, %v1414_v32  ;;  %v1345_v7 = vmul.f32 %v1223_v15, %v2077_v31  ;;  %1639 = vrsqrt.f32 %v2353_v36  ;;  %v1226_v35 = vmul.f32 %v1636_v54, %v1225_v17  ;;  %vm1231_vm8 = vweird.f32 %v1636_v54 }
 0x1e2   : > { %v1063_v45 = vsel %vm1062_vm4, %v1632_v18, %v1059_v13  ;;  %1430 = vst.msk [vmem:[%s2274_s30 + $0x20] sm:$0xff] %vm644_vm3, %v1398_v39  ;;  %v1067_v37 = vmul.f32 0.5, %v1066_v29  ;;  %v870_v49 = vpop.xlane.xlu1 %869  ;;  %v918_v46 = vpop.xlane.xlu2 %917  ;;  %vm1232_vm10 = vmor %vm1230_vm9, %vm1231_vm8  ;;  %vm1240_vm12 = vweird.f32 %v2351_v6  ;;  %vm1080_vm15 = vweird.f32 %v2353_v36 }
 0x1e3   : > { %v1329_v4 = vmul.f32 %v1063_v45, %v2080_v19  ;;  %v1380_v43 = vmul.f32 %v2253_v5, %v1345_v7  ;;  %v948_v31 = vmul.f32 %v870_v49, %v2001_v42  ;;  %v964_v19 = vmul.f32 %v918_v46, %v2001_v42 }
 0x1e4   : > { %v1068_v2 = vsub.f32 1.5, %v1067_v37  ;;  %v1227_v28 = vmul.f32 0.5, %v1226_v35 }
 0x1e5   : > { %v1364_v18 = vmul.f32 %v2253_v5, %v1329_v4  ;;  %v1415_v55 = vadd.f32 %v2262_v41, %v1380_v43  ;;  %v2371_v20 = vadd.f32 1e-05, %v948_v31  ;;  %v2374_v62 = vadd.f32 1e-05, %v964_v19  ;;  %v1638_v0 = vpop.eup %1637 }
 0x1e6   : > { %v1069_v10 = vmul.f32 %v1634_v9, %v1068_v2  ;;  %v1228_v25 = vsub.f32 1.5, %v1227_v28  ;;  %v1235_v56 = vmul.f32 %v1638_v0, %v2351_v6  ;;  %vm1241_vm11 = vweird.f32 %v1638_v0 }
 0x1e7   : > { %v1399_v26 = vadd.f32 %v2262_v41, %v1364_v18  ;;  %1447 = vst.msk [vmem:[%s2274_s30 + $0xa8] sm:$0xff] %vm644_vm3, %v1415_v55  ;;  %1641 = vrsqrt.f32 %v2371_v20  ;;  %v1640_v3 = vpop.eup %1639  ;;  %vm1242_vm14 = vmor %vm1240_vm12, %vm1241_vm11  ;;  %vm1090_vm1 = vweird.f32 %v2371_v20  ;;  %vm1250_vm6 = vweird.f32 %v2374_v62 }
 0x1e8   : > { %v1073_v40 = vsel %vm1072_vm7, %v1634_v9, %v1069_v10  ;;  %1643 = vrsqrt.f32 %v2374_v62  ;;  %v1229_v53 = vmul.f32 %v1636_v54, %v1228_v25  ;;  %v1236_v8 = vmul.f32 %v1638_v0, %v1235_v56 }
 0x1e9   : > { %1431 = vst.msk [vmem:[%s2274_s30 + $0x28] sm:$0xff] %vm644_vm3, %v1399_v26  ;;  %v1330_v52 = vmul.f32 %v1073_v40, %v2094_v33  ;;  %v1075_v16 = vmul.f32 %v1640_v3, %v2353_v36  ;;  %vm1081_vm13 = vweird.f32 %v1640_v3 }
 0x1ea   : > { %v873_v57 = vpop.xlane.xlu2 %872  ;;  %v921_v32 = vpop.xlane.xlu0 %920  ;;  %v1233_v15 = vsel %vm1232_vm10, %v1636_v54, %v1229_v53  ;;  %v1237_v33 = vmul.f32 0.5, %v1236_v8  ;;  %vm1082_vm0 = vmor %vm1080_vm15, %vm1081_vm13 }
 0x1eb   : > { %v1365_v13 = vmul.f32 %v2253_v5, %v1330_v52  ;;  %v949_v9 = vmul.f32 %v873_v57, %v2001_v42  ;;  %v965_v39 = vmul.f32 %v921_v32, %v2001_v42  ;;  %v1076_v29 = vmul.f32 %v1640_v3, %v1075_v16 }
 0x1ec   : > { %v1346_v14 = vmul.f32 %v1233_v15, %v2091_v38  ;;  %v1238_v17 = vsub.f32 1.5, %v1237_v33 }
 0x1ed   : > { %v1642_v7 = vpop.eup %1641  ;;  %v1400_v45 = vadd.f32 %v2262_v41, %v1365_v13  ;;  %v2392_v4 = vadd.f32 1e-05, %v949_v9  ;;  %v2394_v37 = vadd.f32 1e-05, %v965_v39  ;;  %v1077_v49 = vmul.f32 0.5, %v1076_v29 }
 0x1ee   : > { %v1085_v46 = vmul.f32 %v1642_v7, %v2371_v20  ;;  %v1644_v43 = vpop.eup %1643  ;;  %v1381_v54 = vmul.f32 %v2253_v5, %v1346_v14  ;;  %v1239_v38 = vmul.f32 %v1638_v0, %v1238_v17  ;;  %vm1091_vm2 = vweird.f32 %v1642_v7 }
 0x1ef   : > { %1432 = vst.msk [vmem:[%s2274_s30 + $0x30] sm:$0xff] %vm644_vm3, %v1400_v45  ;;  %1645 = vrsqrt.f32 %v2392_v4  ;;  %v1078_v31 = vsub.f32 1.5, %v1077_v49  ;;  %v1245_v2 = vmul.f32 %v1644_v43, %v2374_v62  ;;  %vm1251_vm4 = vweird.f32 %v1644_v43  ;;  %vm1092_vm5 = vmor %vm1090_vm1, %vm1091_vm2 }
 0x1f0   : > { %v1086_v18 = vmul.f32 %v1642_v7, %v1085_v46  ;;  %v1416_v35 = vadd.f32 %v2262_v41, %v1381_v54  ;;  %1647 = vrsqrt.f32 %v2394_v37  ;;  %v1243_v19 = vsel %vm1242_vm14, %v1638_v0, %v1239_v38  ;;  %vm1252_vm7 = vmor %vm1250_vm6, %vm1251_vm4 }
 0x1f1   : > { %v1079_v55 = vmul.f32 %v1640_v3, %v1078_v31  ;;  %v1246_v6 = vmul.f32 %v1644_v43, %v1245_v2  ;;  %v1347_v40 = vmul.f32 %v1243_v19, %v2105_v48  ;;  %vm1100_vm8 = vweird.f32 %v2392_v4 }
 0x1f2   : > { %v1087_v26 = vmul.f32 0.5, %v1086_v18  ;;  %v924_v10 = vpop.xlane.xlu1 %923  ;;  %v876_v28 = vpop.xlane.xlu0 %875  ;;  %1448 = vst.msk [vmem:[%s2274_s30 + $0xb0] sm:$0xff] %vm644_vm3, %v1416_v35  ;;  %vm1260_vm12 = vweird.f32 %v2394_v37 }
 0x1f3   : > { %v966_v25 = vmul.f32 %v924_v10, %v2001_v42  ;;  %v950_v36 = vmul.f32 %v876_v28, %v2001_v42  ;;  %v1083_v56 = vsel %vm1082_vm0, %v1640_v3, %v1079_v55  ;;  %v1247_v0 = vmul.f32 0.5, %v1246_v6 }
 0x1f4   : > { %v1088_v52 = vsub.f32 1.5, %v1087_v26  ;;  %v1382_v8 = vmul.f32 %v2253_v5, %v1347_v40  ;;  %v1331_v16 = vmul.f32 %v1083_v56, %v2108_v12 }
 0x1f5   : > { %v1646_v53 = vpop.eup %1645  ;;  %v2415_v57 = vadd.f32 1e-05, %v966_v25  ;;  %v2417_v48 = vadd.f32 1e-05, %v950_v36  ;;  %v1248_v13 = vsub.f32 1.5, %v1247_v0 }
 0x1f6   : > { %v1089_v32 = vmul.f32 %v1642_v7, %v1088_v52  ;;  %v1095_v9 = vmul.f32 %v1646_v53, %v2392_v4  ;;  %v1648_v39 = vpop.eup %1647  ;;  %v1417_v3 = vadd.f32 %v2262_v41, %v1382_v8  ;;  %v1366_v15 = vmul.f32 %v2253_v5, %v1331_v16 }
 0x1f7   : > { %1649 = vrsqrt.f32 %v2415_v57  ;;  %v1249_v33 = vmul.f32 %v1644_v43, %v1248_v13  ;;  %v1255_v45 = vmul.f32 %v1648_v39, %v2394_v37  ;;  %vm1101_vm9 = vweird.f32 %v1646_v53 }
 0x1f8   : > { %v1093_v12 = vsel %vm1092_vm5, %v1642_v7, %v1089_v32  ;;  %v1096_v29 = vmul.f32 %v1646_v53, %v1095_v9  ;;  %1449 = vst.msk [vmem:[%s2274_s30 + $0xb8] sm:$0xff] %vm644_vm3, %v1417_v3  ;;  %v1401_v14 = vadd.f32 %v2262_v41, %v1366_v15  ;;  %1651 = vrsqrt.f32 %v2417_v48  ;;  %vm1102_vm11 = vmor %vm1100_vm8, %vm1101_vm9 }
 0x1f9   : > { %v1332_v17 = vmul.f32 %v1093_v12, %v2119_v61  ;;  %v1253_v20 = vsel %vm1252_vm7, %v1644_v43, %v1249_v33  ;;  %v1256_v49 = vmul.f32 %v1648_v39, %v1255_v45  ;;  %vm1261_vm10 = vweird.f32 %v1648_v39 }
 0x1fa   : > { %v1097_v62 = vmul.f32 0.5, %v1096_v29  ;;  %v879_v46 = vpop.xlane.xlu1 %878  ;;  %v927_v54 = vpop.xlane.xlu2 %926  ;;  %1433 = vst.msk [vmem:[%s2274_s30 + $0x38] sm:$0xff] %vm644_vm3, %v1401_v14  ;;  %v1348_v38 = vmul.f32 %v1253_v20, %v2122_v1  ;;  %vm1262_vm13 = vmor %vm1260_vm12, %vm1261_vm10  ;;  %vm1270_vm14 = vweird.f32 %v2415_v57  ;;  %vm1110_vm2 = vweird.f32 %v2417_v48 }
 0x1fb   : > { %v1367_v7 = vmul.f32 %v2253_v5, %v1332_v17  ;;  %v951_v31 = vmul.f32 %v879_v46, %v2001_v42  ;;  %v967_v61 = vmul.f32 %v927_v54, %v2001_v42  ;;  %v1257_v43 = vmul.f32 0.5, %v1256_v49 }
 0x1fc   : > { %v1098_v18 = vsub.f32 1.5, %v1097_v62  ;;  %v1383_v19 = vmul.f32 %v2253_v5, %v1348_v38 }
 0x1fd   : > { %v1650_v2 = vpop.eup %1649  ;;  %v1402_v35 = vadd.f32 %v2262_v41, %v1367_v7  ;;  %v2442_v55 = vadd.f32 1e-05, %v951_v31  ;;  %v2444_v26 = vadd.f32 1e-05, %v967_v61  ;;  %v1258_v6 = vsub.f32 1.5, %v1257_v43 }
 0x1fe   : > { %v1099_v1 = vmul.f32 %v1646_v53, %v1098_v18  ;;  %v1265_v10 = vmul.f32 %v1650_v2, %v2415_v57  ;;  %v1652_v28 = vpop.eup %1651  ;;  %v1418_v40 = vadd.f32 %v2262_v41, %v1383_v19  ;;  %vm1271_vm15 = vweird.f32 %v1650_v2 }
 0x1ff   : > { %1434 = vst.msk [vmem:[%s2274_s30 + $0x40] sm:$0xff] %vm644_vm3, %v1402_v35  ;;  %1653 = vrsqrt.f32 %v2442_v55  ;;  %v1259_v36 = vmul.f32 %v1648_v39, %v1258_v6  ;;  %v1105_v52 = vmul.f32 %v1652_v28, %v2417_v48  ;;  %vm1111_vm0 = vweird.f32 %v1652_v28  ;;  %vm1272_vm1 = vmor %vm1270_vm14, %vm1271_vm15 }
 0x200   : > { %v1103_v25 = vsel %vm1102_vm11, %v1646_v53, %v1099_v1  ;;  %v1266_v56 = vmul.f32 %v1650_v2, %v1265_v10  ;;  %1450 = vst.msk [vmem:[%s2274_s30 + $0xc0] sm:$0xff] %vm644_vm3, %v1418_v40  ;;  %1655 = vrsqrt.f32 %v2444_v26  ;;  %vm1112_vm4 = vmor %vm1110_vm2, %vm1111_vm0  ;;  %vm1120_vm6 = vweird.f32 %v2442_v55 }
 0x201   : > { %v1333_v0 = vmul.f32 %v1103_v25, %v2136_v27  ;;  %v1263_v8 = vsel %vm1262_vm13, %v1648_v39, %v1259_v36  ;;  %v1106_v4 = vmul.f32 %v1652_v28, %v1105_v52  ;;  %vm1280_vm9 = vweird.f32 %v2444_v26 }
 0x202   : > { %v1267_v16 = vmul.f32 0.5, %v1266_v56  ;;  %v882_v32 = vpop.xlane.xlu2 %881  ;;  %v930_v13 = vpop.xlane.xlu0 %929  ;;  %v1349_v53 = vmul.f32 %v1263_v8, %v2133_v11 }
 0x203   : > { %v1368_v37 = vmul.f32 %v2253_v5, %v1333_v0  ;;  %v952_v9 = vmul.f32 %v882_v32, %v2001_v42  ;;  %v968_v3 = vmul.f32 %v930_v13, %v2001_v42  ;;  %v1107_v27 = vmul.f32 0.5, %v1106_v4 }
 0x204   : > { %v1268_v15 = vsub.f32 1.5, %v1267_v16  ;;  %v1384_v33 = vmul.f32 %v2253_v5, %v1349_v53 }
 0x205   : > { %v1654_v12 = vpop.eup %1653  ;;  %v1403_v39 = vadd.f32 %v2262_v41, %v1368_v37  ;;  %v2466_v29 = vadd.f32 1e-05, %v952_v9  ;;  %v2468_v45 = vadd.f32 1e-05, %v968_v3  ;;  %v1108_v14 = vsub.f32 1.5, %v1107_v27 }
 0x206   : > { %v1269_v11 = vmul.f32 %v1650_v2, %v1268_v15  ;;  %v1115_v17 = vmul.f32 %v1654_v12, %v2442_v55  ;;  %v1656_v20 = vpop.eup %1655  ;;  %v1419_v62 = vadd.f32 %v2262_v41, %v1384_v33  ;;  %vm1121_vm5 = vweird.f32 %v1654_v12 }
 0x207   : > { %1435 = vst.msk [vmem:[%s2274_s30 + $0x48] sm:$0xff] %vm644_vm3, %v1403_v39  ;;  %1657 = vrsqrt.f32 %v2466_v29  ;;  %v1109_v46 = vmul.f32 %v1652_v28, %v1108_v14  ;;  %v1275_v7 = vmul.f32 %v1656_v20, %v2444_v26  ;;  %vm1281_vm7 = vweird.f32 %v1656_v20  ;;  %vm1122_vm8 = vmor %vm1120_vm6, %vm1121_vm5 }
 0x208   : > { %v1273_v49 = vsel %vm1272_vm1, %v1650_v2, %v1269_v11  ;;  %v1116_v54 = vmul.f32 %v1654_v12, %v1115_v17  ;;  %1451 = vst.msk [vmem:[%s2274_s30 + $0xc8] sm:$0xff] %vm644_vm3, %v1419_v62  ;;  %1659 = vrsqrt.f32 %v2468_v45  ;;  %vm1282_vm10 = vmor %vm1280_vm9, %vm1281_vm7  ;;  %vm1130_vm11 = vweird.f32 %v2466_v29 }
 0x209   : > { %v1350_v38 = vmul.f32 %v1273_v49, %v2147_v24  ;;  %v1113_v31 = vsel %vm1112_vm4, %v1652_v28, %v1109_v46  ;;  %v1276_v57 = vmul.f32 %v1656_v20, %v1275_v7  ;;  %vm1290_vm15 = vweird.f32 %v2468_v45 }
 0x20a   : > { %v1117_v61 = vmul.f32 0.5, %v1116_v54  ;;  %v885_v18 = vpop.xlane.xlu0 %884  ;;  %v1334_v43 = vmul.f32 %v1113_v31, %v2150_v44 }
 0x20b   : > { %v1385_v48 = vmul.f32 %v2253_v5, %v1350_v38  ;;  %v953_v2 = vmul.f32 %v885_v18, %v2001_v42  ;;  %v1277_v19 = vmul.f32 0.5, %v1276_v57 }
 0x20c   : > { %v1118_v35 = vsub.f32 1.5, %v1117_v61  ;;  %v1369_v6 = vmul.f32 %v2253_v5, %v1334_v43 }
 0x20d   : > { %v1658_v1 = vpop.eup %1657  ;;  %v1420_v24 = vadd.f32 %v2262_v41, %v1385_v48  ;;  %v2489_v10 = vadd.f32 1e-05, %v953_v2  ;;  %v1278_v40 = vsub.f32 1.5, %v1277_v19 }
 0x20e   : > { %v1119_v28 = vmul.f32 %v1654_v12, %v1118_v35  ;;  %v1125_v44 = vmul.f32 %v1658_v1, %v2466_v29  ;;  %v1660_v25 = vpop.eup %1659  ;;  %v1404_v36 = vadd.f32 %v2262_v41, %v1369_v6  ;;  %vm1131_vm12 = vweird.f32 %v1658_v1 }
 0x20f   : > { %1452 = vst.msk [vmem:[%s2274_s30 + $0xd0] sm:$0xff] %vm644_vm3, %v1420_v24  ;;  %1661 = vrsqrt.f32 %v2489_v10  ;;  %v1279_v55 = vmul.f32 %v1656_v20, %v1278_v40  ;;  %v1285_v0 = vmul.f32 %v1660_v25, %v2468_v45  ;;  %vm1291_vm13 = vweird.f32 %v1660_v25  ;;  %vm1132_vm14 = vmor %vm1130_vm11, %vm1131_vm12 }
 0x210   : > { %v1123_v56 = vsel %vm1122_vm8, %v1654_v12, %v1119_v28  ;;  %v1126_v52 = vmul.f32 %v1658_v1, %v1125_v44  ;;  %1436 = vst.msk [vmem:[%s2274_s30 + $0x50] sm:$0xff] %vm644_vm3, %v1404_v36  ;;  %vm1292_vm0 = vmor %vm1290_vm15, %vm1291_vm13  ;;  %vm1140_vm2 = vweird.f32 %v2489_v10 }
 0x211   : > { %v1335_v8 = vmul.f32 %v1123_v56, %v2161_v34  ;;  %v1283_v16 = vsel %vm1282_vm10, %v1656_v20, %v1279_v55  ;;  %v1286_v32 = vmul.f32 %v1660_v25, %v1285_v0 }
 0x212   : > { %v1127_v4 = vmul.f32 0.5, %v1126_v52  ;;  %v888_v13 = vpop.xlane.xlu1 %887  ;;  %v894_v37 = vpop.xlane.xlu0 %893  ;;  %v1351_v26 = vmul.f32 %v1283_v16, %v2164_v60 }
 0x213   : > { %v1370_v53 = vmul.f32 %v2253_v5, %v1335_v8  ;;  %v954_v9 = vmul.f32 %v888_v13, %v2001_v42  ;;  %v956_v3 = vmul.f32 %v894_v37, %v2001_v42  ;;  %v1287_v34 = vmul.f32 0.5, %v1286_v32 }
 0x214   : > { %v1128_v15 = vsub.f32 1.5, %v1127_v4  ;;  %v1386_v39 = vmul.f32 %v2253_v5, %v1351_v26 }
 0x215   : > { %v1662_v27 = vpop.eup %1661  ;;  %v1405_v12 = vadd.f32 %v2262_v41, %v1370_v53  ;;  %v2508_v33 = vadd.f32 1e-05, %v954_v9  ;;  %v2510_v11 = vadd.f32 1e-05, %v956_v3  ;;  %v1288_v14 = vsub.f32 1.5, %v1287_v34 }
 0x216   : > { %v1129_v60 = vmul.f32 %v1658_v1, %v1128_v15  ;;  %v1135_v17 = vmul.f32 %v1662_v27, %v2489_v10  ;;  %v1421_v29 = vadd.f32 %v2262_v41, %v1386_v39  ;;  %vm1141_vm1 = vweird.f32 %v1662_v27 }
 0x217   : > { %1437 = vst.msk [vmem:[%s2274_s30 + $0x58] sm:$0xff] %vm644_vm3, %v1405_v12  ;;  %1663 = vrsqrt.f32 %v2508_v33  ;;  %v1289_v62 = vmul.f32 %v1660_v25, %v1288_v14  ;;  %vm1142_vm4 = vmor %vm1140_vm2, %vm1141_vm1  ;;  %vm1150_vm7 = vweird.f32 %v2508_v33  ;;  %vm1170_vm9 = vweird.f32 %v2510_v11 }
 0x218   : > { %v1133_v20 = vsel %vm1132_vm14, %v1658_v1, %v1129_v60  ;;  %v1136_v49 = vmul.f32 %v1662_v27, %v1135_v17  ;;  %1665 = vrsqrt.f32 %v2510_v11  ;;  %1453 = vst.msk [vmem:[%s2274_s30 + $0xd8] sm:$0xff] %vm644_vm3, %v1421_v29 }
 0x219   : > { %v1336_v46 = vmul.f32 %v1133_v20, %v2178_v51  ;;  %v1293_v54 = vsel %vm1292_vm0, %v1660_v25, %v1289_v62 }
 0x21a   : > { %v1137_v7 = vmul.f32 0.5, %v1136_v49  ;;  %v897_v38 = vpop.xlane.xlu1 %896  ;;  %v939_v31 = vpop.xlane.xlu0 %938  ;;  %v1352_v45 = vmul.f32 %v1293_v54, %v2175_v47 }
 0x21b   : > { %v1371_v61 = vmul.f32 %v2253_v5, %v1336_v46  ;;  %v957_v57 = vmul.f32 %v897_v38, %v2001_v42  ;;  %v891_v18 = vpop.xlane.xlu2 %890  ;;  %v971_v48 = vmul.f32 %v939_v31, %v2001_v42 }
 0x21c   : > { %v1138_v43 = vsub.f32 1.5, %v1137_v7  ;;  %v955_v2 = vmul.f32 %v891_v18, %v2001_v42  ;;  %v1387_v19 = vmul.f32 %v2253_v5, %v1352_v45 }
 0x21d   : > { %v1664_v51 = vpop.eup %1663  ;;  %v1406_v35 = vadd.f32 %v2262_v41, %v1371_v61  ;;  %v2529_v1 = vadd.f32 1e-05, %v957_v57  ;;  %v2531_v24 = vadd.f32 1e-05, %v971_v48 }
 0x21e   : > { %v1666_v47 = vpop.eup %1665  ;;  %v1139_v6 = vmul.f32 %v1662_v27, %v1138_v43  ;;  %v1145_v28 = vmul.f32 %v1664_v51, %v2508_v33  ;;  %v2535_v40 = vadd.f32 1e-05, %v955_v2  ;;  %v1422_v44 = vadd.f32 %v2262_v41, %v1387_v19 }
 0x21f   : > { %1438 = vst.msk [vmem:[%s2274_s30 + $0x60] sm:$0xff] %vm644_vm3, %v1406_v35  ;;  %v1165_v25 = vmul.f32 %v1666_v47, %v2510_v11  ;;  %1667 = vrsqrt.f32 %v2529_v1  ;;  %vm1151_vm5 = vweird.f32 %v1664_v51  ;;  %vm1171_vm6 = vweird.f32 %v1666_v47 }
 0x220   : > { %v1143_v36 = vsel %vm1142_vm4, %v1662_v27, %v1139_v6  ;;  %v1146_v56 = vmul.f32 %v1664_v51, %v1145_v28  ;;  %1669 = vrsqrt.f32 %v2535_v40  ;;  %1454 = vst.msk [vmem:[%s2274_s30 + $0xe0] sm:$0xff] %vm644_vm3, %v1422_v44  ;;  %vm1152_vm8 = vmor %vm1150_vm7, %vm1151_vm5  ;;  %vm1180_vm11 = vweird.f32 %v2529_v1 }
 0x221   : > { %v1337_v10 = vmul.f32 %v1143_v36, %v2188_v30  ;;  %v1166_v55 = vmul.f32 %v1666_v47, %v1165_v25  ;;  %1671 = vrsqrt.f32 %v2531_v24  ;;  %vm1172_vm10 = vmor %vm1170_vm9, %vm1171_vm6  ;;  %vm1160_vm0 = vweird.f32 %v2535_v40 }
 0x222   : > { %v1147_v52 = vmul.f32 0.5, %v1146_v56  ;;  %v933_v0 = vpop.xlane.xlu1 %932  ;;  %vm1320_vm2 = vweird.f32 %v2531_v24 }
 0x223   : > { %v1372_v8 = vmul.f32 %v2253_v5, %v1337_v10  ;;  %v1167_v16 = vmul.f32 0.5, %v1166_v55  ;;  %v969_v4 = vmul.f32 %v933_v0, %v2001_v42  ;;  %v936_v32 = vpop.xlane.xlu2 %935 }
 0x224   : > { %v1148_v13 = vsub.f32 1.5, %v1147_v52  ;;  %v970_v37 = vmul.f32 %v936_v32, %v2001_v42 }
 0x225   : > { %v1668_v53 = vpop.eup %1667  ;;  %v1407_v26 = vadd.f32 %v2262_v41, %v1372_v8  ;;  %v1168_v30 = vsub.f32 1.5, %v1167_v16  ;;  %v2551_v9 = vadd.f32 1e-05, %v969_v4 }
 0x226   : > { %v1670_v3 = vpop.eup %1669  ;;  %v1149_v15 = vmul.f32 %v1664_v51, %v1148_v13  ;;  %v1175_v34 = vmul.f32 %v1668_v53, %v2529_v1  ;;  %v2555_v27 = vadd.f32 1e-05, %v970_v37  ;;  %vm1181_vm12 = vweird.f32 %v1668_v53 }
 0x227   : > { %v1672_v12 = vpop.eup %1671  ;;  %1439 = vst.msk [vmem:[%s2274_s30 + $0x68] sm:$0xff] %vm644_vm3, %v1407_v26  ;;  %v1169_v42 = vmul.f32 %v1666_v47, %v1168_v30  ;;  %v1155_v39 = vmul.f32 %v1670_v3, %v2535_v40  ;;  %1673 = vrsqrt.f32 %v2551_v9  ;;  %vm1161_vm13 = vweird.f32 %v1670_v3  ;;  %vm1182_vm15 = vmor %vm1180_vm11, %vm1181_vm12 }
 0x228   : > { %v1153_v60 = vsel %vm1152_vm8, %v1664_v51, %v1149_v15  ;;  %v1176_v14 = vmul.f32 %v1668_v53, %v1175_v34  ;;  %v1315_v33 = vmul.f32 %v1672_v12, %v2531_v24  ;;  %1675 = vrsqrt.f32 %v2555_v27  ;;  %vm1162_vm1 = vmor %vm1160_vm0, %vm1161_vm13  ;;  %v1677_v24 = vld [vmem:[%s2615_s3] ss:$0 sm:$0xff] }
 0x229   : > { %v1338_v17 = vmul.f32 %v1153_v60, %v2196_v50  ;;  %v1173_v29 = vsel %vm1172_vm10, %v1666_v47, %v1169_v42  ;;  %v1156_v20 = vmul.f32 %v1670_v3, %v1155_v39  ;;  %vm1321_vm14 = vweird.f32 %v1672_v12 }
 0x22a   : > { %v1340_v62 = vmul.f32 %v1173_v29, %v2199_v58  ;;  %v1177_v49 = vmul.f32 0.5, %v1176_v14  ;;  %v1316_v46 = vmul.f32 %v1672_v12, %v1315_v33  ;;  %vm1322_vm4 = vmor %vm1320_vm2, %vm1321_vm14  ;;  %vm1300_vm6 = vweird.f32 %v2551_v9 }
 0x22b   : > { %v1373_v11 = vmul.f32 %v2253_v5, %v1338_v17  ;;  %v1157_v54 = vmul.f32 0.5, %v1156_v20  ;;  %vm1310_vm9 = vweird.f32 %v2555_v27 }
 0x22c   : > { %v1375_v7 = vmul.f32 %v2253_v5, %v1340_v62  ;;  %v1178_v38 = vsub.f32 1.5, %v1177_v49  ;;  %v1317_v50 = vmul.f32 0.5, %v1316_v46 }
 0x22d   : > { %v1674_v31 = vpop.eup %1673  ;;  %v1408_v61 = vadd.f32 %v2262_v41, %v1373_v11  ;;  %v1158_v58 = vsub.f32 1.5, %v1157_v54 }
 0x22e   : > { %v1410_v45 = vadd.f32 %v2262_v41, %v1375_v7  ;;  %v1179_v57 = vmul.f32 %v1668_v53, %v1178_v38  ;;  %v1318_v18 = vsub.f32 1.5, %v1317_v50  ;;  %v1295_v48 = vmul.f32 %v1674_v31, %v2551_v9  ;;  %v1676_v2 = vpop.eup %1675 }
 0x22f   : > { %1440 = vst.msk [vmem:[%s2274_s30 + $0x70] sm:$0xff] %vm644_vm3, %v1408_v61  ;;  %v1159_v43 = vmul.f32 %v1670_v3, %v1158_v58  ;;  %v1305_v1 = vmul.f32 %v1676_v2, %v2555_v27  ;;  %vm1301_vm5 = vweird.f32 %v1674_v31  ;;  %vm1311_vm8 = vweird.f32 %v1676_v2 }
 0x230   : > { %1442 = vst.msk [vmem:[%s2274_s30 + $0x80] sm:$0xff] %vm644_vm3, %v1410_v45  ;;  %v1183_v51 = vsel %vm1182_vm15, %v1668_v53, %v1179_v57  ;;  %v1319_v35 = vmul.f32 %v1672_v12, %v1318_v18  ;;  %v1296_v19 = vmul.f32 %v1674_v31, %v1295_v48  ;;  %vm1302_vm7 = vmor %vm1300_vm6, %vm1301_vm5 }
 0x231   : > { %v1341_v47 = vmul.f32 %v1183_v51, %v2212_v22  ;;  %v1163_v6 = vsel %vm1162_vm1, %v1670_v3, %v1159_v43  ;;  %v1306_v56 = vmul.f32 %v1676_v2, %v1305_v1  ;;  %vm1312_vm10 = vmor %vm1310_vm9, %vm1311_vm8 }
 0x232   : > { %v1339_v28 = vmul.f32 %v1163_v6, %v2219_v23  ;;  %v1323_v40 = vsel %vm1322_vm4, %v1672_v12, %v1319_v35  ;;  %v1297_v44 = vmul.f32 0.5, %v1296_v19 }
 0x233   : > { %v1376_v25 = vmul.f32 %v2253_v5, %v1341_v47  ;;  %v1355_v36 = vmul.f32 %v1323_v40, %v2215_v63  ;;  %v1307_v52 = vmul.f32 0.5, %v1306_v56  ;;  %v1678_v63 = vld [vmem:[%s2616_s4] ss:$0 sm:$0xff] }
 0x234   : > { %v1374_v22 = vmul.f32 %v1677_v24, %v1339_v28  ;;  %v1298_v10 = vsub.f32 1.5, %v1297_v44 }
 0x235   : > { %v1411_v55 = vadd.f32 %v2262_v41, %v1376_v25  ;;  %v1390_v23 = vmul.f32 %v1677_v24, %v1355_v36  ;;  %v1308_v16 = vsub.f32 1.5, %v1307_v52 }
 0x236   : > { %v1409_v0 = vadd.f32 %v2262_v41, %v1374_v22  ;;  %v1299_v8 = vmul.f32 %v1674_v31, %v1298_v10 }
 0x237   : > { %1443 = vst.msk [vmem:[%s2274_s30 + $0x88] sm:$0xff] %vm644_vm3, %v1411_v55  ;;  %v1425_v5 = vadd.f32 %v1678_v63, %v1390_v23  ;;  %v1309_v32 = vmul.f32 %v1676_v2, %v1308_v16 }
 0x238   : > { %1441 = vst.msk [vmem:[%s2274_s30 + $0x78] sm:$0xff] %vm644_vm3, %v1409_v0  ;;  %v1303_v4 = vsel %vm1302_vm7, %v1674_v31, %v1299_v8 }
 0x239   : > { %1457 = vst.msk [vmem:[%s2274_s30 + $0xf8] sm:$0xff] %vm644_vm3, %v1425_v5  ;;  %v1353_v41 = vmul.f32 %v1303_v4, %v2228_v59  ;;  %v1313_v37 = vsel %vm1312_vm10, %v1676_v2, %v1309_v32 }
 0x23a   : > { %v1354_v53 = vmul.f32 %v1313_v37, %v2233_v21 }
 0x23b   : > { %v1388_v13 = vmul.f32 %v1677_v24, %v1353_v41 }
 0x23c   : > { %v1389_v30 = vmul.f32 %v1677_v24, %v1354_v53 }
 0x23d   : > { %v1423_v26 = vadd.f32 %v1678_v63, %v1388_v13 }
 0x23e   : > { %v1424_v9 = vadd.f32 %v1678_v63, %v1389_v30 }
 0x23f   : > { %1455 = vst.msk [vmem:[%s2274_s30 + $0xe8] sm:$0xff] %vm644_vm3, %v1423_v26 }
 0x240   : > { %1456 = vst.msk [vmem:[%s2274_s30 + $0xf0] sm:$0xff] %vm644_vm3, %v1424_v9 }
 0x241 PF: > { %s15_s18 = sadd.s32 1, %s1685_s18  }
 0x242   : > { %p12_p4 = scmp.ge.s32.totalorder %s15_s18, 4  }
 0x244   :  { %14 = sbr.rel (!%p12_p4) target bundleno = 1 (0x1), region = 70 }

</bundles_post_ra>
